<compile_context>
chip_gen: v5e
topology: v5e:2x2
jax: 0.10.0
libtpu: 0.0.40
codegen_flags: <defaults>
</compile_context>

<pallas_src>
import jax
import jax.numpy as jnp
from jax.experimental import pallas as pl
from jax.experimental.pallas import tpu as pltpu

INPUT_DIM = 100
HIDDEN_DIM = 256
OUTPUT_DIM = 64 * 64  # 4096


def _default_tile_n():
    """Per-chip output tile width for the streamed Wh operand."""
    try:
        kind = jax.devices()[0].device_kind.lower()
    except Exception:  # pragma: no cover - defensive; 2048 is safe everywhere
        kind = ""
    if "v7" in kind:
        # v7x: 4 MiB f32 tile (2 MiB bf16), double-buffered 8 MiB << 32 MiB
        # scoped VMEM; keeps the 3.2 TB/s HBM stream saturated.
        return 4096
    # v5e / v6e: 2 MiB f32 tile; DMA time >> per-step overhead, smaller
    # exposed prologue than a 4 MiB slab.
    return 2048


def _fused_kernel(x_ref, w1_ref, b1_ref, w2_ref, b2_ref, wh_ref, bh_ref, out_ref):
    # --- encoder (recomputed per step; ~0.4 MFLOP, hidden under the Wh DMA)
    # TODO(synk): Dropout(0.2) is identity in eval mode; training-mode dropout
    # (pltpu.prng_random_bits mask) intentionally not applied.
    h = jnp.dot(x_ref[...], w1_ref[...],
                preferred_element_type=jnp.float32) + b1_ref[...]
    h = jnp.maximum(h, 0.0)
    h = jnp.dot(h, w2_ref[...],
                preferred_element_type=jnp.float32) + b2_ref[...]
    h = jnp.maximum(h, 0.0)

    # --- ensemble head tile: (B, H) @ (H, TILE_N) + (1, TILE_N)
    pred = jnp.dot(h.astype(wh_ref.dtype), wh_ref[...],
                   preferred_element_type=jnp.float32)
    out_ref[...] = (pred + bh_ref[...].astype(jnp.float32)).astype(out_ref.dtype)


def s2s_prediction_forward(x, w1, b1, w2, b2, wh, bh, *,
                           head_weight_dtype=jnp.float32, tile_n=None):
    """x: (B, 100); wh: (E, 256, 4096); bh: (E, 4096) -> (E, B, 4096) float32.

    head_weight_dtype: storage/streaming dtype for Wh/bh (jnp.float32 for
    exact parity with the PyTorch module, jnp.bfloat16 to halve the dominant
    HBM weight stream; accumulation stays float32 either way).
    """
    B = x.shape[0]
    E, H, O = wh.shape
    assert H == HIDDEN_DIM and O == OUTPUT_DIM, (H, O)
    assert x.shape[1] == INPUT_DIM, x.shape

    if tile_n is None:
        tile_n = _default_tile_n()
    assert OUTPUT_DIM % tile_n == 0, (OUTPUT_DIM, tile_n)
    n_tiles = OUTPUT_DIM // tile_n

    # Streamed head parameters (optionally down-cast); tiny encoder params
    # stay f32 and resident in VMEM.
    wh_s = wh.astype(head_weight_dtype)
    bh_s = bh.astype(head_weight_dtype).reshape(E, 1, OUTPUT_DIM)
    b1r = b1.reshape(1, HIDDEN_DIM)
    b2r = b2.reshape(1, HIDDEN_DIM)

    const2d = lambda e, n: (0, 0)
    grid_spec = pltpu.PrefetchScalarGridSpec(
        num_scalar_prefetch=0,
        grid=(E, n_tiles),
        in_specs=[
            # Encoder operands: constant index -> fetched once, resident.
            pl.BlockSpec((B, INPUT_DIM), const2d),
            pl.BlockSpec((INPUT_DIM, HIDDEN_DIM), const2d),
            pl.BlockSpec((1, HIDDEN_DIM), const2d),
            pl.BlockSpec((HIDDEN_DIM, HIDDEN_DIM), const2d),
            pl.BlockSpec((1, HIDDEN_DIM), const2d),
            # Wh[e] N-tile: (HIDDEN_DIM, tile_n) in-kernel (leading E squeezed).
            pl.BlockSpec((pl.Squeezed(), HIDDEN_DIM, tile_n),
                         lambda e, n: (e, 0, n)),
            # bh[e] N-tile: (1, tile_n) in-kernel; tiny, fully overlapped DMA.
            pl.BlockSpec((pl.Squeezed(), 1, tile_n), lambda e, n: (e, 0, n)),
        ],
        out_specs=pl.BlockSpec((pl.Squeezed(), B, tile_n),
                               lambda e, n: (e, 0, n)),
    )

    w_bytes = jnp.dtype(head_weight_dtype).itemsize
    flops = (2 * E * B * HIDDEN_DIM * OUTPUT_DIM                 # heads
             + E * n_tiles * 2 * B * (INPUT_DIM * HIDDEN_DIM     # encoder
                                      + HIDDEN_DIM * HIDDEN_DIM))
    bytes_accessed = (w_bytes * E * HIDDEN_DIM * OUTPUT_DIM      # Wh stream (dominant)
                      + w_bytes * E * OUTPUT_DIM                 # bh
                      + 4 * E * B * OUTPUT_DIM                   # output
                      + 4 * (B * INPUT_DIM + INPUT_DIM * HIDDEN_DIM
                             + HIDDEN_DIM * HIDDEN_DIM + 2 * HIDDEN_DIM))

    return pl.pallas_call(
        _fused_kernel,
        out_shape=jax.ShapeDtypeStruct((E, B, OUTPUT_DIM), jnp.float32),
        grid_spec=grid_spec,
        compiler_params=pltpu.CompilerParams(
            # Every grid point writes a disjoint output tile, no accumulator:
            # both axes parallel -> E*n_tiles independent units for megacore.
            dimension_semantics=("parallel", "parallel"),
        ),
        cost_estimate=pl.CostEstimate(
            flops=flops, transcendentals=0, bytes_accessed=bytes_accessed),
    )(x, w1, b1r, w2, b2r, wh_s, bh_s)


def reference_forward(x, w1, b1, w2, b2, wh, bh):
    h = jnp.maximum(x @ w1 + b1, 0.0)
    h = jnp.maximum(h @ w2 + b2, 0.0)
    return jnp.einsum("bh,eho->ebo", h, wh) + bh[:, None, :]


if __name__ == "__main__":
    ensemble_size = 4
    batch = 2

    key = jax.random.PRNGKey(0)
    keys = jax.random.split(key, 8)

    # Deterministic synthetic parameters (shapes from module __init__).
    x = jax.random.normal(keys[0], (batch, INPUT_DIM), dtype=jnp.float32)
    w1 = jax.random.normal(keys[1], (INPUT_DIM, HIDDEN_DIM), jnp.float32) * 0.05
    b1 = jax.random.normal(keys[2], (HIDDEN_DIM,), jnp.float32) * 0.01
    w2 = jax.random.normal(keys[3], (HIDDEN_DIM, HIDDEN_DIM), jnp.float32) * 0.05
    b2 = jax.random.normal(keys[4], (HIDDEN_DIM,), jnp.float32) * 0.01
    wh = jax.random.normal(keys[5], (ensemble_size, HIDDEN_DIM, OUTPUT_DIM),
                           jnp.float32) * 0.05
    bh = jax.random.normal(keys[6], (ensemble_size, OUTPUT_DIM), jnp.float32) * 0.01

    ref = reference_forward(x, w1, b1, w2, b2, wh, bh)

    # --- default path: f32 weights, exact-parity semantics
    out = s2s_prediction_forward(x, w1, b1, w2, b2, wh, bh)
    out = jax.block_until_ready(out)
    assert out.shape == (ensemble_size, batch, OUTPUT_DIM), out.shape
    assert jnp.allclose(out, ref, atol=1e-3, rtol=1e-3), "f32 mismatch vs reference"

    # --- bf16 weight-streaming path (2x less HBM traffic; deliberate numerics
    #     change -> relaxed tolerance)
    out_bf16 = s2s_prediction_forward(x, w1, b1, w2, b2, wh, bh,
                                      head_weight_dtype=jnp.bfloat16)
    out_bf16 = jax.block_until_ready(out_bf16)
    assert jnp.allclose(out_bf16, ref, atol=1e-2, rtol=1e-2), "bf16 mismatch vs reference"

    print("KERNEL_OK")
</pallas_src>

<mosaic_0001>
module attributes {stable_mosaic.version = 11 : i64} {
  func.func @_fused_kernel(%arg0: i32, %arg1: i32, %arg2: memref<2x100xf32, #tpu.memory_space<vmem>>, %arg3: memref<100x256xf32, #tpu.memory_space<vmem>>, %arg4: memref<1x256xf32, #tpu.memory_space<vmem>>, %arg5: memref<256x256xf32, #tpu.memory_space<vmem>>, %arg6: memref<1x256xf32, #tpu.memory_space<vmem>>, %arg7: memref<1x256x2048xf32, #tpu.memory_space<vmem>>, %arg8: memref<1x1x2048xf32, #tpu.memory_space<vmem>>, %arg9: memref<1x2x2048xf32, #tpu.memory_space<vmem>>) attributes {dimension_semantics = [#tpu.dimension_semantics<parallel>, #tpu.dimension_semantics<parallel>], iteration_bounds = array<i64: 4, 2>, scalar_prefetch = 0 : i64, scratch_operands = 0 : i64, tpu.core_type = #tpu.core_type<tc>, window_params = [{pipeline_mode = #tpu.pipeline_mode<synchronous>, transform_indices = @transform_0, window_bounds = array<i64: 2, 100>}, {pipeline_mode = #tpu.pipeline_mode<synchronous>, transform_indices = @transform_1, window_bounds = array<i64: 100, 256>}, {pipeline_mode = #tpu.pipeline_mode<synchronous>, transform_indices = @transform_2, window_bounds = array<i64: 1, 256>}, {pipeline_mode = #tpu.pipeline_mode<synchronous>, transform_indices = @transform_3, window_bounds = array<i64: 256, 256>}, {pipeline_mode = #tpu.pipeline_mode<synchronous>, transform_indices = @transform_4, window_bounds = array<i64: 1, 256>}, {transform_indices = @transform_5, window_bounds = array<i64: 1, 256, 2048>}, {transform_indices = @transform_6, window_bounds = array<i64: 1, 1, 2048>}, {transform_indices = @transform_7, window_bounds = array<i64: 1, 2, 2048>}]} {
    %c0 = arith.constant 0 : index
    %c0_0 = arith.constant 0 : index
    %0 = vector.load %arg2[%c0, %c0_0] : memref<2x100xf32, #tpu.memory_space<vmem>>, vector<2x100xf32>
    %c0_1 = arith.constant 0 : index
    %c0_2 = arith.constant 0 : index
    %1 = vector.load %arg3[%c0_1, %c0_2] : memref<100x256xf32, #tpu.memory_space<vmem>>, vector<100x256xf32>
    %cst = arith.constant dense<0.000000e+00> : vector<2x256xf32>
    %2 = tpu.matmul %0, %1, %cst {dimension_numbers = #tpu.dot_dimension_numbers<[1], [0], [0], [1], [0, 0, 1, 1], [], []>} : vector<2x100xf32>, vector<100x256xf32>, vector<2x256xf32> -> vector<2x256xf32>
    %c0_3 = arith.constant 0 : index
    %c0_4 = arith.constant 0 : index
    %3 = vector.load %arg4[%c0_3, %c0_4] : memref<1x256xf32, #tpu.memory_space<vmem>>, vector<1x256xf32>
    %4 = vector.broadcast %3 : vector<1x256xf32> to vector<2x256xf32>
    %5 = arith.addf %2, %4 : vector<2x256xf32>
    %cst_5 = arith.constant 0.000000e+00 : f32
    %6 = vector.broadcast %cst_5 : f32 to vector<2x256xf32>
    %7 = arith.maximumf %5, %6 : vector<2x256xf32>
    %c0_6 = arith.constant 0 : index
    %c0_7 = arith.constant 0 : index
    %8 = vector.load %arg5[%c0_6, %c0_7] : memref<256x256xf32, #tpu.memory_space<vmem>>, vector<256x256xf32>
    %cst_8 = arith.constant dense<0.000000e+00> : vector<2x256xf32>
    %9 = tpu.matmul %7, %8, %cst_8 {dimension_numbers = #tpu.dot_dimension_numbers<[1], [0], [0], [1], [0, 0, 1, 1], [], []>} : vector<2x256xf32>, vector<256x256xf32>, vector<2x256xf32> -> vector<2x256xf32>
    %c0_9 = arith.constant 0 : index
    %c0_10 = arith.constant 0 : index
    %10 = vector.load %arg6[%c0_9, %c0_10] : memref<1x256xf32, #tpu.memory_space<vmem>>, vector<1x256xf32>
    %11 = vector.broadcast %10 : vector<1x256xf32> to vector<2x256xf32>
    %12 = arith.addf %9, %11 : vector<2x256xf32>
    %cst_11 = arith.constant 0.000000e+00 : f32
    %13 = vector.broadcast %cst_11 : f32 to vector<2x256xf32>
    %14 = arith.maximumf %12, %13 : vector<2x256xf32>
    %c0_12 = arith.constant 0 : index
    %c0_13 = arith.constant 0 : index
    %c0_14 = arith.constant 0 : index
    %15 = vector.load %arg7[%c0_12, %c0_13, %c0_14] : memref<1x256x2048xf32, #tpu.memory_space<vmem>>, vector<1x256x2048xf32>
    %16 = vector.shape_cast %15 : vector<1x256x2048xf32> to vector<256x2048xf32>
    %cst_15 = arith.constant dense<0.000000e+00> : vector<2x2048xf32>
    %17 = tpu.matmul %14, %16, %cst_15 {dimension_numbers = #tpu.dot_dimension_numbers<[1], [0], [0], [1], [0, 0, 1, 1], [], []>} : vector<2x256xf32>, vector<256x2048xf32>, vector<2x2048xf32> -> vector<2x2048xf32>
    %c0_16 = arith.constant 0 : index
    %c0_17 = arith.constant 0 : index
    %c0_18 = arith.constant 0 : index
    %18 = vector.load %arg8[%c0_16, %c0_17, %c0_18] : memref<1x1x2048xf32, #tpu.memory_space<vmem>>, vector<1x1x2048xf32>
    %19 = vector.shape_cast %18 : vector<1x1x2048xf32> to vector<1x2048xf32>
    %20 = vector.broadcast %19 : vector<1x2048xf32> to vector<2x2048xf32>
    %21 = arith.addf %17, %20 : vector<2x2048xf32>
    %c0_19 = arith.constant 0 : index
    %c0_20 = arith.constant 0 : index
    %c0_21 = arith.constant 0 : index
    %22 = vector.load %arg9[%c0_19, %c0_20, %c0_21] : memref<1x2x2048xf32, #tpu.memory_space<vmem>>, vector<1x2x2048xf32>
    %23 = vector.shape_cast %22 : vector<1x2x2048xf32> to vector<2x2048xf32>
    %24 = vector.shape_cast %21 : vector<2x2048xf32> to vector<1x2x2048xf32>
    tpu.vector_store %arg9[%c0_19, %c0_20, %c0_21], %24 {strides = array<i32>} : memref<1x2x2048xf32, #tpu.memory_space<vmem>>, vector<1x2x2048xf32>,
    return
  }
  func.func @transform_0(%arg0: i32, %arg1: i32) -> (i32, i32) {
    %c0_i32 = arith.constant 0 : i32
    %c0_i32_0 = arith.constant 0 : i32
    %c0_i32_1 = arith.constant 0 : i32
    return %c0_i32, %c0_i32_0 : i32, i32
  }
  func.func @transform_1(%arg0: i32, %arg1: i32) -> (i32, i32) {
    %c0_i32 = arith.constant 0 : i32
    %c0_i32_0 = arith.constant 0 : i32
    %c0_i32_1 = arith.constant 0 : i32
    return %c0_i32, %c0_i32_0 : i32, i32
  }
  func.func @transform_2(%arg0: i32, %arg1: i32) -> (i32, i32) {
    %c0_i32 = arith.constant 0 : i32
    %c0_i32_0 = arith.constant 0 : i32
    %c0_i32_1 = arith.constant 0 : i32
    return %c0_i32, %c0_i32_0 : i32, i32
  }
  func.func @transform_3(%arg0: i32, %arg1: i32) -> (i32, i32) {
    %c0_i32 = arith.constant 0 : i32
    %c0_i32_0 = arith.constant 0 : i32
    %c0_i32_1 = arith.constant 0 : i32
    return %c0_i32, %c0_i32_0 : i32, i32
  }
  func.func @transform_4(%arg0: i32, %arg1: i32) -> (i32, i32) {
    %c0_i32 = arith.constant 0 : i32
    %c0_i32_0 = arith.constant 0 : i32
    %c0_i32_1 = arith.constant 0 : i32
    return %c0_i32, %c0_i32_0 : i32, i32
  }
  func.func @transform_5(%arg0: i32, %arg1: i32) -> (i32, i32, i32) {
    %c0_i32 = arith.constant 0 : i32
    %c0_i32_0 = arith.constant 0 : i32
    return %arg0, %c0_i32, %arg1 : i32, i32, i32
  }
  func.func @transform_6(%arg0: i32, %arg1: i32) -> (i32, i32, i32) {
    %c0_i32 = arith.constant 0 : i32
    %c0_i32_0 = arith.constant 0 : i32
    return %arg0, %c0_i32, %arg1 : i32, i32, i32
  }
  func.func @transform_7(%arg0: i32, %arg1: i32) -> (i32, i32, i32) {
    %c0_i32 = arith.constant 0 : i32
    %c0_i32_0 = arith.constant 0 : i32
    return %arg0, %c0_i32, %arg1 : i32, i32, i32
  }
}

</mosaic_0001>

<bundles_post_ra>
// kernel: tpu_custom_call.1
= control target key start
LH: loop header
LB: loop body
LE: loop exit
PB: predicated region body
PF: predicated region fallthrough
CT: control target
= control target key end

     0   :  { %s3454_s0 = inlined_call_operand.hbm [shape: f32[2,100], index: 0, kind: input, shape index: {}]   ;;  %s3455_s1 = inlined_call_operand.hbm [shape: f32[100,256], index: 1, kind: input, shape index: {}]   ;;  %s3456_s2 = inlined_call_operand.hbm [shape: f32[1,256], index: 2, kind: input, shape index: {}]   ;;  %s3457_s3 = inlined_call_operand.hbm [shape: f32[256,256], index: 3, kind: input, shape index: {}]   ;;  %s3458_s4 = inlined_call_operand.hbm [shape: f32[1,256], index: 4, kind: input, shape index: {}]   ;;  %s3459_s5 = inlined_call_operand.hbm [shape: f32[4,256,4096], index: 5, kind: input, shape index: {}]   ;;  %s3460_s6 = inlined_call_operand.hbm [shape: f32[4,1,4096], index: 6, kind: input, shape index: {}]   ;;  %s3461_s7 = inlined_call_operand.hbm [shape: f32[4,2,4096], index: 7, kind: output, shape index: {}]  }
   0x1   :  { %3470 = sst [smem:[#allocation27_spill]] %s3454_s0 }
   0x2   :  { %3471 = sst [smem:[#allocation28_spill]] %s3455_s1 }
   0x3   :  { %3472 = sst [smem:[#allocation29_spill]] %s3456_s2 }
   0x4   :  { %3473 = sst [smem:[#allocation30_spill]] %s3457_s3 }
   0x5   :  { %3474 = sst [smem:[#allocation31_spill]] %s3461_s7 }
   0x6   :  { %12 = vsyncpa [#allocation3], 0 }
   0x7   :  { %13 = vsyncpa [#allocation6], 0 }
   0x8   :  { %14 = vsyncpa [#allocation9], 0 }
   0x9   :  { %15 = vsyncpa [#allocation12], 0 }
   0xa   :  { %17 = vsyncpa [#allocation12 + $0x1], 0 }
   0xb   :  { %18 = vsyncpa [#allocation4], 0 }
   0xc   :  { %20 = vsyncpa [#allocation4 + $0x1], 0  ;;  %s2637_s24 = smov 0   ;;  %s2639_s25 = smov 0  }
   0xd   :  { %s2641_s26 = smov 0   ;;  %s2643_s27 = smov 0  }
   0xe   :  { %s2645_s28 = smov 0   ;;  %s2647_s29 = smov 0  }
   0xf   :  { %s2649_s30 = smov 0   ;;  %s2651_s8 = smov 0  }
  0x10 LB: > { %3475 = sst [smem:[#allocation20_spill]] %s2557_s24  ;;  %s2678_s9 = sadd.s32 4294967295, %s2585_s8   ;;  %s2585_s8 = sphi %s2651_s8, %s26_s8   ;;  %s2581_s30 = sphi %s2649_s30, %s3509_s30   ;;  %s2577_s29 = sphi %s2647_s29, %s3508_s29   ;;  %s2573_s28 = sphi %s2645_s28, %s3507_s28   ;;  %s2569_s27 = sphi %s2643_s27, %s3506_s27   ;;  %s2565_s26 = sphi %s2641_s26, %s3505_s26   ;;  %s2561_s25 = sphi %s2639_s25, %s3504_s25   ;;  %s2557_s24 = sphi %s2637_s24, %s3503_s24  }
  0x11   : > { %3476 = sst [smem:[#allocation21_spill]] %s2569_s27  ;;  %s2092_s10 = sadd.s32 4294967294, %s2585_s8  }
  0x12   : > { %3477 = sst [smem:[#allocation22_spill]] %s2573_s28  ;;  %p165_p0 = scmp.ne.s32.totalorder %s2561_s25, %s2557_s24 }
  0x13   : > { %p166_p1 = scmp.eq.s32.totalorder %s2678_s9, 0  ;;  %p219_p2 = scmp.eq.s32.totalorder %s2678_s9, 7 }
  0x14   : > { %p225_p3 = scmp.eq.s32.totalorder %s2092_s10, 7  ;;  %p2093_p5 = scmp.ge.s32.totalorder %s2585_s8, 1 }
  0x15   : > { %p2687_p4 = por %p166_p1, %p165_p0  ;;  %p232_p7 = scmp.lt.s32.totalorder %s2585_s8, 9 }
  0x16   : > { %p2692_p6 = por %p225_p3, %p165_p0  ;;  %s3481_s1 = sld [smem:[#allocation28_spill]] }
  0x17   : > { %p2700_p8 = pnand %p2093_p5, %p232_p7  ;;  %s2587_s17 = smov [#allocation5]  }
  0x18   : > { %s3479_s12 = scalar_select %p2692_p6, 1, 0 }
  0x19   : > { %p2152_p9 = pneg %p2700_p8  ;;  %s257_s18 = sshll.u32 %s2587_s17, 4  ;;  %s258_s18 = int_to_ptr.vmem [resolvable:$true] %s257_s18 }
  0x1a   : > { %3480 = sst [smem:[#allocation23_spill]] %s3479_s12  ;;  %s2588_s23 = smov 256  }
  0x1b   : > { %p2708_p10 = pnand %p2152_p9, %p166_p1  ;;  %s3484_s3 = sld [smem:[#allocation30_spill]] }
  0x1c   : > { %s255_s15 = sshll.u32 %s3481_s1, 4  ;;  %s2589_s10 = smov 16   ;;  %s256_s15 = int_to_ptr.hbm [resolvable:$true] %s255_s15 }
  0x1d   : > { %2158 = dma.hbm_to_vmem [thread:$0]  (!%p2708_p10), %s256_s15, 3328, %s258_s18, [#allocation6], %s2588_s23, %s2588_s23, %s2589_s10  }
  0x1e   : > { %s2590_s13 = smov [#allocation8]   ;;  %s35_s17 = sadd.s32 1, %s2577_s29 }
  0x1f   : > { %s283_s14 = sshll.u32 %s2590_s13, 4  ;;  %s38_s20 = sadd.s32 1, %s2581_s30  ;;  %s284_s14 = int_to_ptr.vmem [resolvable:$true] %s283_s14 }
  0x20   : > { %p36_p11 = scmp.ge.s32.totalorder %s35_s17, 2  ;;  %s152_s21 = sadd.s32 1, %s2565_s26 }
  0x21   : > { %s281_s22 = sshll.u32 %s3484_s3, 4  ;;  %p159_p12 = scmp.ne.s32.totalorder %s2565_s26, %s2561_s25  ;;  %s282_s22 = int_to_ptr.hbm [resolvable:$true] %s281_s22 }
  0x22   : > { %2164 = dma.hbm_to_vmem [thread:$0]  (!%p2708_p10), %s282_s22, 8192, %s284_s14, [#allocation9], %s2588_s23, %s2588_s23, %s2589_s10  }
  0x23   : > { %p160_p13 = scmp.eq.s32.totalorder %s2585_s8, 0  ;;  %s3511_s17 = smov (%p36_p11, %s35_s17), 0 }
  0x24   : > { %3485 = sst [smem:[#allocation24_spill]] %s3511_s17  ;;  %s3513_s20 = smov (!%p36_p11, %s38_s20), %s2581_s30 }
  0x25   : > { %s148_s15 = ssub.s32 %s2577_s29, %s3511_s17  ;;  %p2730_p0 = por %p160_p13, %p159_p12 }
  0x26   : > { %p40_p3 = scmp.ge.s32.totalorder %s3513_s20, 4  ;;  %p2736_p5 = por %p219_p2, %p159_p12 }
  0x27   : > { %p2184_p7 = scmp.lt.s32.totalorder %s2585_s8, 8  ;;  %s309_s23 = sand.u32 1, %s2585_s8  }
  0x28   : > { %s3487_s22 = scalar_select %p2736_p5, 1, 0 }
  0x29   : > { %s3515_s20 = smov (%p40_p3, %s3513_s20), 0  ;;  %s3469_s10 = sand.u32 1, %s2565_s26  }
  0x2a   : > { %3488 = sst [smem:[#allocation25_spill]] %s3487_s22  ;;  %s147_s13 = ssub.s32 %s2581_s30, %s3515_s20 }
  0x2b   : > { %3489 = sst [smem:[#allocation26_spill]] %s3515_s20  ;;  %s2100_s14 = sshll.u32 %s3469_s10, 12 }
  0x2c   : > { %s149_s1 = sor.u32 %s148_s15, %s147_s13  ;;  %s2101_s3 = sshll.u32 %s2577_s29, 4 }
  0x2d   : > { %p150_p9 = scmp.eq.s32.totalorder %s149_s1, 0  ;;  %s2102_s17 = sshll.u32 %s2581_s30, 10 }
  0x2e   : > { %s313_s12 = scalar_lea.vmem [#allocation11], %s2100_s14  ;;  %s318_s22 = sadd.s32 %s2102_s17, %s2101_s3 }
  0x2f   : > { %s323_s24 = sshll.u32 %s313_s12, 4  ;;  %s2103_s28 = sshll.u32 %s318_s22, 3  ;;  %s324_s24 = int_to_ptr.vmem [resolvable:$true] %s323_s24 }
  0x30   : > { %s2752_s7 = scalar_select %p150_p9, %s2565_s26, %s152_s21  }
  0x31   : > { %p2760_p2 = pnand %p2184_p7, %p2730_p0  ;;  %s320_s1 = scalar_lea.hbm %s3459_s5, %s2103_s28 }
  0x32   : > { %s321_s15 = sshll.u32 %s320_s1, 4  ;;  %s2767_s12 = scalar_lea.sflag [#allocation12], %s309_s23  ;;  %s322_s15 = int_to_ptr.hbm [resolvable:$true] %s321_s15 }
  0x33   : > { %s2591_s17 = smov 4096   ;;  %s2592_s21 = smov 2048  }
  0x34   : > { %s2593_s18 = smov 128   ;;  %s3491_s0 = sld [smem:[#allocation27_spill]] }
  0x35   : > { %2171 = dma.hbm_to_vmem [thread:$0]  (!%p2760_p2), %s322_s15, 65536, %s324_s24, %s2767_s12, %s2591_s17, %s2592_s21, %s2593_s18  }
  0x36   : > { %s2594_s20 = smov [#allocation2]   ;;  %s3492_s2 = sld [smem:[#allocation29_spill]] }
  0x37   : > { %s246_s28 = sshll.u32 %s2594_s20, 4  ;;  %s296_s17 = sshll.u32 %s3458_s4, 4  ;;  %s247_s28 = int_to_ptr.vmem [resolvable:$true] %s246_s28  ;;  %s297_s17 = int_to_ptr.hbm [resolvable:$true] %s296_s17 }
  0x38   : > { %s2595_s21 = smov [#allocation7]   ;;  %s2596_s22 = smov [#allocation10]  }
  0x39   : > { %s272_s18 = sshll.u32 %s2595_s21, 4  ;;  %s298_s13 = sshll.u32 %s2596_s22, 4  ;;  %s273_s18 = int_to_ptr.vmem [resolvable:$true] %s272_s18  ;;  %s299_s13 = int_to_ptr.vmem [resolvable:$true] %s298_s13 }
  0x3a   : > { %s244_s14 = sshll.u32 %s3491_s0, 4  ;;  %s3493_s20 = sand.u32 1, %s2565_s26   ;;  %s245_s14 = int_to_ptr.hbm [resolvable:$true] %s244_s14 }
  0x3b   : > { %2155 = dma.hbm_to_vmem [thread:$0]  (!%p2708_p10), %s245_s14, 32, %s247_s28, [#allocation3]  }
  0x3c   : > { %s270_s23 = sshll.u32 %s3492_s2, 4  ;;  %s2104_s10 = sshll.u32 %s3493_s20, 4  ;;  %s271_s23 = int_to_ptr.hbm [resolvable:$true] %s270_s23 }
  0x3d   : > { %2161 = dma.hbm_to_vmem [thread:$0]  (!%p2708_p10), %s271_s23, 32, %s273_s18, [#allocation6]  }
  0x3e   : > { %2167 = dma.hbm_to_vmem [thread:$0]  (!%p2708_p10), %s297_s17, 32, %s299_s13, [#allocation9]  }
  0x3f   : > { %s2106_s14 = sshll.u32 %s2581_s30, 5  ;;  %s337_s28 = scalar_lea.vmem [#allocation13], %s2104_s10 }
  0x40   : > { %s347_s1 = sshll.u32 %s337_s28, 4  ;;  %s342_s24 = sadd.s32 %s2106_s14, %s2101_s3  ;;  %s348_s1 = int_to_ptr.vmem [resolvable:$true] %s347_s1 }
  0x41   : > { %s343_s0 = scalar_lea.hbm %s3460_s6, %s342_s24  ;;  %356 = sbr.rel (%p2700_p8) target bundleno = 721 (0x2d1), region = 48 }
  0x42   : > { %s345_s2 = sshll.u32 %s343_s0, 4  ;;  %s346_s2 = int_to_ptr.hbm [resolvable:$true] %s345_s2 }
  0x43   : > { %2174 = dma.hbm_to_vmem [thread:$0]  (!%p2760_p2), %s346_s2, 256, %s348_s1, %s2767_s12  }
  0x46   : > { %2536 = dma.done.wait (%p166_p1), [#allocation3], 32  }
  0x47   : > { %2538 = vsyncadd (%p166_p1), [#allocation3], 4294967264 }
  0x48   : > { %2540 = dma.done.wait (%p166_p1), [#allocation6], 3360  }
  0x49   : > { %2542 = vsyncadd (%p166_p1), [#allocation6], 4294963936 }
  0x4a   : > { %2544 = dma.done.wait (%p166_p1), [#allocation9], 8224  }
  0x4b   : > { %2546 = vsyncadd (%p166_p1), [#allocation9], 4294959072  ;;  %s383_s0 = sand.u32 1, %s2678_s9   ;;  %s2814_s2 = sand.u32 1, %s2561_s25  }
  0x4c   : > { %s2113_s3 = sshll.u32 %s2814_s2, 12  ;;  %s384_s27 = scalar_lea.sflag [#allocation12], %s383_s0 }
  0x4d   : > { %s2817_s16 = scalar_lea.vmem [#allocation11], %s2113_s3 }
  0x4e   : > { %2548 = dma.done.wait (%p2687_p4), %s384_s27, 65792  }
  0x4f   : > { %2550 = vsyncadd (%p2687_p4), %s384_s27, 4294901504  ;;  %vm474_vm0 = vcmask 1043456   ;;  %v462_v0 = vld [vmem:[#allocation5 + $0xc0] sm:$0xf]  ;;  %v460_v1 = vld [vmem:[#allocation5 + $0xb0] sm:$0xff]  ;;  %vm470_vm1 = vcmask 818176  }
  0x50   : > { %v463_v2 = vld [vmem:[#allocation5 + $0xc8] sm:$0xf]  ;;  %2116 = vmatpush.msk.msra.mxu0 %vm474_vm0, %v462_v0  ;;  %v461_v3 = vld [vmem:[#allocation5 + $0xb8] sm:$0xff]  ;;  %v458_v4 = vld [vmem:[#allocation5 + $0xa0] sm:$0xff]  ;;  %s2114_s9 = sshll.u32 %s2814_s2, 4  ;;  %s2115_s19 = sshll.u32 %s2814_s2, 5 }
  0x51   : > { %2118 = vmatpush.msk.msra.mxu1 %vm474_vm0, %v463_v2  ;;  %v459_v5 = vld [vmem:[#allocation5 + $0xa8] sm:$0xff]  ;;  %v456_v6 = vld [vmem:[#allocation5 + $0x90] sm:$0xff]  ;;  %v457_v7 = vld [vmem:[#allocation5 + $0x98] sm:$0xff]  ;;  %s3236_s11 = scalar_lea.vmem [#allocation13], %s2114_s9  ;;  %vm1891_vm2 = vcmask 1041408   ;;  %vm1893_vm3 = vcmask 1045508  }
  0x52   : > { %485 = vmatpush.msra.mxu0 %v460_v1  ;;  %v454_v8 = vld [vmem:[#allocation5 + $0x80] sm:$0xff]  ;;  %v455_v9 = vld [vmem:[#allocation5 + $0x88] sm:$0xff]  ;;  %v452_v10 = vld [vmem:[#allocation5 + $0x70] sm:$0xff]  ;;  %s3289_s12 = scalar_lea.vmem [#allocation14], %s2115_s19  ;;  %s3494_s23 = sld [smem:[#allocation21_spill]] }
  0x53   : > { %505 = vmatpush.msra.mxu1 %v461_v3  ;;  %v453_v11 = vld [vmem:[#allocation5 + $0x78] sm:$0xff]  ;;  %v553_v12 = vld [vmem:[#allocation8 + $0xf0] sm:$0xff]  ;;  %v448_v19 = vld [vmem:[#allocation5 + $0x50] sm:$0xff]  ;;  %s3495_s17 = sld [smem:[#allocation22_spill]]  ;;  %s1929_s15 = sshll.u32 %s3289_s12, 4  ;;  %s1930_s15 = int_to_ptr.vmem [resolvable:$true] %s1929_s15 }
  0x54   : > { %486 = vmatpush.msra.mxu0 %v458_v4  ;;  %v551_v13 = vld [vmem:[#allocation8 + $0xe0] sm:$0xff]  ;;  %v450_v14 = vld [vmem:[#allocation5 + $0x60] sm:$0xff]  ;;  %v451_v15 = vld [vmem:[#allocation5 + $0x68] sm:$0xff]  ;;  %593 = vmatpush.msra.mxu2 %v553_v12  ;;  %s3496_s28 = sld [smem:[#allocation31_spill]]  ;;  %s1914_s3 = scalar_lea.sflag [#allocation4], %s2814_s2 }
  0x55   : > { %506 = vmatpush.msra.mxu1 %v459_v5  ;;  %v585_v16 = vld [vmem:[#allocation8 + $0x1f0] sm:$0xff]  ;;  %v583_v18 = vld [vmem:[#allocation8 + $0x1e0] sm:$0xff]  ;;  %v437_v41 = vld [vmem:[#allocation2] sm:$0x3] }
  0x56   : > { %487 = vmatpush.msra.mxu0 %v456_v6  ;;  %v549_v17 = vld [vmem:[#allocation8 + $0xd0] sm:$0xff]  ;;  %v449_v20 = vld [vmem:[#allocation5 + $0x58] sm:$0xff]  ;;  %594 = vmatpush.msra.mxu2 %v551_v13  ;;  %v444_v27 = vld [vmem:[#allocation5 + $0x30] sm:$0xff] }
  0x57   : > { %507 = vmatpush.msra.mxu1 %v457_v7  ;;  %613 = vmatpush.msra.mxu3 %v585_v16  ;;  %v547_v21 = vld [vmem:[#allocation8 + $0xc0] sm:$0xff]  ;;  %v581_v22 = vld [vmem:[#allocation8 + $0x1d0] sm:$0xff]  ;;  %v554_v42 = vld [vmem:[#allocation8 + $0xf8] sm:$0xff] }
  0x58   : > { %488 = vmatpush.msra.mxu0 %v454_v8  ;;  %v446_v23 = vld [vmem:[#allocation5 + $0x40] sm:$0xff]  ;;  %v447_v24 = vld [vmem:[#allocation5 + $0x48] sm:$0xff]  ;;  %595 = vmatpush.msra.mxu2 %v549_v17  ;;  %v579_v26 = vld [vmem:[#allocation8 + $0x1c0] sm:$0xff]  ;;  %s2121_s18 = sshll.u32 %s3494_s23, 4 }
  0x59   : > { %508 = vmatpush.msra.mxu1 %v455_v9  ;;  %614 = vmatpush.msra.mxu3 %v583_v18  ;;  %v545_v25 = vld [vmem:[#allocation8 + $0xb0] sm:$0xff]  ;;  %v445_v28 = vld [vmem:[#allocation5 + $0x38] sm:$0xff]  ;;  %v440_v35 = vld [vmem:[#allocation5 + $0x10] sm:$0xff]  ;;  %s2122_s22 = sshll.u32 %s3495_s17, 5 }
  0x5a   : > { %489 = vmatpush.msra.mxu0 %v452_v10  ;;  %596 = vmatpush.msra.mxu2 %v547_v21  ;;  %v543_v29 = vld [vmem:[#allocation8 + $0xa0] sm:$0xff]  ;;  %v577_v30 = vld [vmem:[#allocation8 + $0x1b0] sm:$0xff]  ;;  %v586_v43 = vld [vmem:[#allocation8 + $0x1f8] sm:$0xff]  ;;  %s1925_s13 = sadd.s32 %s2122_s22, %s2121_s18  ;;  %s3497_s1 = smov %s3496_s28 }
  0x5b   : > { %509 = vmatpush.msra.mxu1 %v453_v11  ;;  %615 = vmatpush.msra.mxu3 %v581_v22  ;;  %v442_v31 = vld [vmem:[#allocation5 + $0x20] sm:$0xff]  ;;  %v443_v32 = vld [vmem:[#allocation5 + $0x28] sm:$0xff]  ;;  %v575_v34 = vld [vmem:[#allocation8 + $0x1a0] sm:$0xff]  ;;  %s2123_s20 = sshll.u32 %s1925_s13, 1  ;;  %s2495_s19 = scalar_lea.hbm %s3497_s1, 256 }
  0x5c   : > { %490 = vmatpush.msra.mxu0 %v450_v14  ;;  %597 = vmatpush.msra.mxu2 %v545_v25  ;;  %v541_v33 = vld [vmem:[#allocation8 + $0x90] sm:$0xff]  ;;  %v441_v36 = vld [vmem:[#allocation5 + $0x18] sm:$0xff]  ;;  %v550_v50 = vld [vmem:[#allocation8 + $0xd8] sm:$0xff]  ;;  %s1927_s24 = scalar_lea.hbm %s3496_s28, %s2123_s20 }
  0x5d   : > { %510 = vmatpush.msra.mxu1 %v451_v15  ;;  %616 = vmatpush.msra.mxu3 %v579_v26  ;;  %v539_v37 = vld [vmem:[#allocation8 + $0x80] sm:$0xff]  ;;  %v573_v38 = vld [vmem:[#allocation8 + $0x190] sm:$0xff]  ;;  %v552_v46 = vld [vmem:[#allocation8 + $0xe8] sm:$0xff]  ;;  %s1931_s0 = sshll.u32 %s1927_s24, 4  ;;  %s1932_s0 = int_to_ptr.hbm [resolvable:$true] %s1931_s0 }
  0x5e   : > { %491 = vmatpush.msra.mxu0 %v448_v19  ;;  %598 = vmatpush.msra.mxu2 %v543_v29  ;;  %v438_v39 = vld [vmem:[#allocation5] sm:$0xff]  ;;  %v439_v40 = vld [vmem:[#allocation5 + $0x8] sm:$0xff]  ;;  %v571_v45 = vld [vmem:[#allocation8 + $0x180] sm:$0xff]  ;;  %s2489_s27 = sshra.s32 %s1932_s0, 4  ;;  %s2490_s27 = int_to_ptr.hbm [resolvable:$true] %s2489_s27 }
  0x5f   : > { %511 = vmatpush.msra.mxu1 %v449_v20  ;;  %617 = vmatpush.msra.mxu3 %v577_v30  ;;  %v537_v44 = vld [vmem:[#allocation8 + $0x70] sm:$0xff]  ;;  %v584_v47 = vld [vmem:[#allocation8 + $0x1e8] sm:$0xff]  ;;  %v535_v48 = vld [vmem:[#allocation8 + $0x60] sm:$0xff]  ;;  %p2496_p10 = scmp.lt.s32.totalorder %s2490_s27, %s3497_s1 }
  0x60   : > { %492 = vmatpush.msra.mxu0 %v446_v23  ;;  %599 = vmatpush.msra.mxu2 %v541_v33  ;;  %v569_v49 = vld [vmem:[#allocation8 + $0x170] sm:$0xff]  ;;  %v582_v51 = vld [vmem:[#allocation8 + $0x1d8] sm:$0xff]  ;;  %v567_v53 = vld [vmem:[#allocation8 + $0x160] sm:$0xff] }
  0x61   : > { %512 = vmatpush.msra.mxu1 %v447_v24  ;;  %618 = vmatpush.msra.mxu3 %v575_v34  ;;  %v533_v52 = vld [vmem:[#allocation8 + $0x50] sm:$0xff]  ;;  %v548_v54 = vld [vmem:[#allocation8 + $0xc8] sm:$0xff]  ;;  %v531_v56 = vld [vmem:[#allocation8 + $0x40] sm:$0xff] }
  0x62   : > { %493 = vmatpush.msra.mxu0 %v444_v27  ;;  %600 = vmatpush.msra.mxu2 %v539_v37  ;;  %v580_v55 = vld [vmem:[#allocation8 + $0x1c8] sm:$0xff]  ;;  %v565_v57 = vld [vmem:[#allocation8 + $0x150] sm:$0xff]  ;;  %v546_v58 = vld [vmem:[#allocation8 + $0xb8] sm:$0xff] }
  0x63   : > { %513 = vmatpush.msra.mxu1 %v445_v28  ;;  %619 = vmatpush.msra.mxu3 %v573_v38  ;;  %v578_v59 = vld [vmem:[#allocation8 + $0x1b8] sm:$0xff]  ;;  %v529_v60 = vld [vmem:[#allocation8 + $0x30] sm:$0xff]  ;;  %v563_v61 = vld [vmem:[#allocation8 + $0x140] sm:$0xff] }
  0x64   : > { %494 = vmatpush.msra.mxu0 %v442_v31  ;;  %601 = vmatpush.msra.mxu2 %v537_v44  ;;  %v544_v62 = vld [vmem:[#allocation8 + $0xa8] sm:$0xff]  ;;  %v542_v0 = vld [vmem:[#allocation8 + $0x98] sm:$0xff]  ;;  %v527_v13 = vld [vmem:[#allocation8 + $0x20] sm:$0xff] }
  0x65   : > { %514 = vmatpush.msra.mxu1 %v443_v32  ;;  %620 = vmatpush.msra.mxu3 %v571_v45  ;;  %v576_v63 = vld [vmem:[#allocation8 + $0x1a8] sm:$0xff]  ;;  %v574_v1 = vld [vmem:[#allocation8 + $0x198] sm:$0xff]  ;;  %v561_v14 = vld [vmem:[#allocation8 + $0x130] sm:$0xff] }
  0x66   : > { %495 = vmatpush.msra.mxu0 %v440_v35  ;;  %602 = vmatpush.msra.mxu2 %v535_v48  ;;  %v540_v2 = vld [vmem:[#allocation8 + $0x88] sm:$0xff]  ;;  %v538_v4 = vld [vmem:[#allocation8 + $0x78] sm:$0xff]  ;;  %v525_v17 = vld [vmem:[#allocation8 + $0x10] sm:$0xff] }
  0x67   : > { %515 = vmatpush.msra.mxu1 %v441_v36  ;;  %621 = vmatpush.msra.mxu3 %v569_v49  ;;  %v572_v3 = vld [vmem:[#allocation8 + $0x188] sm:$0xff]  ;;  %v570_v5 = vld [vmem:[#allocation8 + $0x178] sm:$0xff]  ;;  %v559_v18 = vld [vmem:[#allocation8 + $0x120] sm:$0xff] }
  0x68   : > { %496 = vmatpush.msra.mxu0 %v438_v39  ;;  %603 = vmatpush.msra.mxu2 %v533_v52  ;;  %v536_v6 = vld [vmem:[#allocation8 + $0x68] sm:$0xff]  ;;  %v534_v8 = vld [vmem:[#allocation8 + $0x58] sm:$0xff]  ;;  %v523_v21 = vld [vmem:[#allocation8] sm:$0xff] }
  0x69   : > { %516 = vmatpush.msra.mxu1 %v439_v40  ;;  %2117 = vmatmul.msk.f32.vlgmr.msra.gmra.mxu0 %vm470_vm1, %v437_v41  ;;  %v568_v7 = vld [vmem:[#allocation8 + $0x168] sm:$0xff]  ;;  %v566_v9 = vld [vmem:[#allocation8 + $0x158] sm:$0xff]  ;;  %v557_v22 = vld [vmem:[#allocation8 + $0x110] sm:$0xff] }
  0x6a   : > { %2119 = vmatmul.msk.f32.vlgmr.msra.gmra.mxu1 %vm470_vm1, %v437_v41  ;;  %633 = vmatpush.msrb.mxu0 %v554_v42  ;;  %v532_v10 = vld [vmem:[#allocation8 + $0x48] sm:$0xff]  ;;  %v530_v12 = vld [vmem:[#allocation8 + $0x38] sm:$0xff]  ;;  %v555_v25 = vld [vmem:[#allocation8 + $0x100] sm:$0xff] }
  0x6b   : > { %653 = vmatpush.msrb.mxu1 %v586_v43  ;;  %622 = vmatpush.msra.mxu3 %v567_v53  ;;  %v564_v11 = vld [vmem:[#allocation8 + $0x148] sm:$0xff]  ;;  %v562_v16 = vld [vmem:[#allocation8 + $0x138] sm:$0xff] }
  0x6c   : > { %634 = vmatpush.msrb.mxu0 %v552_v46  ;;  %604 = vmatpush.msra.mxu2 %v531_v56  ;;  %v528_v15 = vld [vmem:[#allocation8 + $0x28] sm:$0xff]  ;;  %v526_v19 = vld [vmem:[#allocation8 + $0x18] sm:$0xff] }
  0x6d   : > { %654 = vmatpush.msrb.mxu1 %v584_v47  ;;  %623 = vmatpush.msra.mxu3 %v565_v57  ;;  %v560_v20 = vld [vmem:[#allocation8 + $0x128] sm:$0xff]  ;;  %v558_v24 = vld [vmem:[#allocation8 + $0x118] sm:$0xff] }
  0x6e   : > { %635 = vmatpush.msrb.mxu0 %v550_v50  ;;  %605 = vmatpush.msra.mxu2 %v529_v60  ;;  %v524_v23 = vld [vmem:[#allocation8 + $0x8] sm:$0xff] }
  0x6f   : > { %655 = vmatpush.msrb.mxu1 %v582_v51  ;;  %624 = vmatpush.msra.mxu3 %v563_v61  ;;  %v556_v26 = vld [vmem:[#allocation8 + $0x108] sm:$0xff] }
  0x70   : > { %636 = vmatpush.msrb.mxu0 %v548_v54  ;;  %606 = vmatpush.msra.mxu2 %v527_v13  ;;  %v1171_v27 = vld [vmem:[%s2817_s16 + $0xf80] sm:$0xff]  ;;  %v1172_v28 = vld [vmem:[%s2817_s16 + $0xf88] sm:$0xff] }
  0x71   : > { %656 = vmatpush.msrb.mxu1 %v580_v55  ;;  %625 = vmatpush.msra.mxu3 %v561_v14  ;;  %v1155_v29 = vld [vmem:[%s2817_s16 + $0xf00] sm:$0xff]  ;;  %v1156_v30 = vld [vmem:[%s2817_s16 + $0xf08] sm:$0xff] }
  0x72   : > { %637 = vmatpush.msrb.mxu0 %v546_v58  ;;  %607 = vmatpush.msra.mxu2 %v525_v17  ;;  %v1139_v31 = vld [vmem:[%s2817_s16 + $0xe80] sm:$0xff]  ;;  %v916_v33 = vld [vmem:[%s2817_s16 + $0x788] sm:$0xff] }
  0x73   : > { %657 = vmatpush.msrb.mxu1 %v578_v59  ;;  %626 = vmatpush.msra.mxu3 %v559_v18  ;;  %v915_v32 = vld [vmem:[%s2817_s16 + $0x780] sm:$0xff]  ;;  %v1140_v34 = vld [vmem:[%s2817_s16 + $0xe88] sm:$0xff] }
  0x74   : > { %638 = vmatpush.msrb.mxu0 %v544_v62  ;;  %608 = vmatpush.msra.mxu2 %v523_v21  ;;  %v899_v35 = vld [vmem:[%s2817_s16 + $0x700] sm:$0xff]  ;;  %v900_v37 = vld [vmem:[%s2817_s16 + $0x708] sm:$0xff] }
  0x75   : > { %658 = vmatpush.msrb.mxu1 %v576_v63  ;;  %627 = vmatpush.msra.mxu3 %v557_v22  ;;  %v1123_v36 = vld [vmem:[%s2817_s16 + $0xe00] sm:$0xff]  ;;  %v1124_v39 = vld [vmem:[%s2817_s16 + $0xe08] sm:$0xff] }
  0x76   : > { %639 = vmatpush.msrb.mxu0 %v542_v0  ;;  %1223 = vmatpush.msrb.mxu2 %v915_v32  ;;  %v883_v38 = vld [vmem:[%s2817_s16 + $0x680] sm:$0xff]  ;;  %v884_v40 = vld [vmem:[%s2817_s16 + $0x688] sm:$0xff]  ;;  %v1173_v32 = vld [vmem:[%s2817_s16 + $0xf90] sm:$0xff] }
  0x77   : > { %659 = vmatpush.msrb.mxu1 %v574_v1  ;;  %628 = vmatpush.msra.mxu3 %v555_v25  ;;  %v1107_v41 = vld [vmem:[%s2817_s16 + $0xd80] sm:$0xff]  ;;  %v1108_v43 = vld [vmem:[%s2817_s16 + $0xd88] sm:$0xff] }
  0x78   : > { %640 = vmatpush.msrb.mxu0 %v540_v2  ;;  %1224 = vmatpush.msrb.mxu2 %v899_v35  ;;  %v867_v42 = vld [vmem:[%s2817_s16 + $0x600] sm:$0xff]  ;;  %v868_v44 = vld [vmem:[%s2817_s16 + $0x608] sm:$0xff] }
  0x79   : > { %660 = vmatpush.msrb.mxu1 %v572_v3  ;;  %1243 = vmatpush.msrb.mxu3 %v1171_v27  ;;  %v1091_v45 = vld [vmem:[%s2817_s16 + $0xd00] sm:$0xff]  ;;  %v1092_v47 = vld [vmem:[%s2817_s16 + $0xd08] sm:$0xff] }
  0x7a   : > { %641 = vmatpush.msrb.mxu0 %v538_v4  ;;  %1225 = vmatpush.msrb.mxu2 %v883_v38  ;;  %v851_v46 = vld [vmem:[%s2817_s16 + $0x580] sm:$0xff]  ;;  %v852_v48 = vld [vmem:[%s2817_s16 + $0x588] sm:$0xff] }
  0x7b   : > { %661 = vmatpush.msrb.mxu1 %v570_v5  ;;  %1244 = vmatpush.msrb.mxu3 %v1155_v29  ;;  %v1075_v49 = vld [vmem:[%s2817_s16 + $0xc80] sm:$0xff]  ;;  %v1076_v51 = vld [vmem:[%s2817_s16 + $0xc88] sm:$0xff]  ;;  %v464_v5 = vld [vmem:[#allocation7] sm:$0x3] }
  0x7c   : > { %642 = vmatpush.msrb.mxu0 %v536_v6  ;;  %1226 = vmatpush.msrb.mxu2 %v867_v42  ;;  %v835_v50 = vld [vmem:[%s2817_s16 + $0x500] sm:$0xff]  ;;  %v836_v52 = vld [vmem:[%s2817_s16 + $0x508] sm:$0xff]  ;;  %v467_v13 = vperm.slane %v464_v5, 1  ;;  %v917_v42 = vld [vmem:[%s2817_s16 + $0x790] sm:$0xff] }
  0x7d   : > { %662 = vmatpush.msrb.mxu1 %v568_v7  ;;  %1245 = vmatpush.msrb.mxu3 %v1139_v31  ;;  %v1059_v53 = vld [vmem:[%s2817_s16 + $0xc00] sm:$0xff]  ;;  %v1060_v55 = vld [vmem:[%s2817_s16 + $0xc08] sm:$0xff] }
  0x7e   : > { %643 = vmatpush.msrb.mxu0 %v534_v8  ;;  %1227 = vmatpush.msrb.mxu2 %v851_v46  ;;  %v819_v54 = vld [vmem:[%s2817_s16 + $0x480] sm:$0xff]  ;;  %v820_v56 = vld [vmem:[%s2817_s16 + $0x488] sm:$0xff]  ;;  %v901_v46 = vld [vmem:[%s2817_s16 + $0x710] sm:$0xff] }
  0x7f   : > { %663 = vmatpush.msrb.mxu1 %v566_v9  ;;  %1246 = vmatpush.msrb.mxu3 %v1123_v36  ;;  %v1043_v57 = vld [vmem:[%s2817_s16 + $0xb80] sm:$0xff]  ;;  %v1044_v59 = vld [vmem:[%s2817_s16 + $0xb88] sm:$0xff]  ;;  %v1157_v36 = vld [vmem:[%s2817_s16 + $0xf10] sm:$0xff] }
  0x80   : > { %644 = vmatpush.msrb.mxu0 %v532_v10  ;;  %1228 = vmatpush.msrb.mxu2 %v835_v50  ;;  %v803_v58 = vld [vmem:[%s2817_s16 + $0x400] sm:$0xff]  ;;  %v804_v60 = vld [vmem:[%s2817_s16 + $0x408] sm:$0xff]  ;;  %v885_v50 = vld [vmem:[%s2817_s16 + $0x690] sm:$0xff] }
  0x81   : > { %664 = vmatpush.msrb.mxu1 %v564_v11  ;;  %1247 = vmatpush.msrb.mxu3 %v1107_v41  ;;  %v1027_v61 = vld [vmem:[%s2817_s16 + $0xb00] sm:$0xff]  ;;  %v1028_v63 = vld [vmem:[%s2817_s16 + $0xb08] sm:$0xff]  ;;  %v1142_v41 = vld [vmem:[%s2817_s16 + $0xe98] sm:$0xff] }
  0x82   : > { %645 = vmatpush.msrb.mxu0 %v530_v12  ;;  %1229 = vmatpush.msrb.mxu2 %v819_v54  ;;  %v787_v62 = vld [vmem:[%s2817_s16 + $0x380] sm:$0xff]  ;;  %v788_v0 = vld [vmem:[%s2817_s16 + $0x388] sm:$0xff]  ;;  %v466_v12 = vperm.slane %v464_v5, 0  ;;  %v869_v54 = vld [vmem:[%s2817_s16 + $0x610] sm:$0xff] }
  0x83   : > { %665 = vmatpush.msrb.mxu1 %v562_v16  ;;  %1248 = vmatpush.msrb.mxu3 %v1091_v45  ;;  %v1011_v1 = vld [vmem:[%s2817_s16 + $0xa80] sm:$0xff]  ;;  %v1012_v3 = vld [vmem:[%s2817_s16 + $0xa88] sm:$0xff]  ;;  %v1126_v45 = vld [vmem:[%s2817_s16 + $0xe18] sm:$0xff] }
  0x84   : > { %646 = vmatpush.msrb.mxu0 %v528_v15  ;;  %1230 = vmatpush.msrb.mxu2 %v803_v58  ;;  %v771_v2 = vld [vmem:[%s2817_s16 + $0x300] sm:$0xff]  ;;  %v772_v4 = vld [vmem:[%s2817_s16 + $0x308] sm:$0xff]  ;;  %v853_v58 = vld [vmem:[%s2817_s16 + $0x590] sm:$0xff] }
  0x85   : > { %666 = vmatpush.msrb.mxu1 %v560_v20  ;;  %1249 = vmatpush.msrb.mxu3 %v1075_v49  ;;  %v995_v6 = vld [vmem:[%s2817_s16 + $0xa00] sm:$0xff]  ;;  %v996_v8 = vld [vmem:[%s2817_s16 + $0xa08] sm:$0xff]  ;;  %v1110_v49 = vld [vmem:[%s2817_s16 + $0xd98] sm:$0xff] }
  0x86   : > { %647 = vmatpush.msrb.mxu0 %v526_v19  ;;  %1231 = vmatpush.msrb.mxu2 %v787_v62  ;;  %v755_v7 = vld [vmem:[%s2817_s16 + $0x280] sm:$0xff]  ;;  %v756_v9 = vld [vmem:[%s2817_s16 + $0x288] sm:$0xff]  ;;  %v837_v62 = vld [vmem:[%s2817_s16 + $0x510] sm:$0xff] }
  0x87   : > { %667 = vmatpush.msrb.mxu1 %v558_v24  ;;  %1250 = vmatpush.msrb.mxu3 %v1059_v53  ;;  %v979_v10 = vld [vmem:[%s2817_s16 + $0x980] sm:$0xff]  ;;  %v980_v14 = vld [vmem:[%s2817_s16 + $0x988] sm:$0xff]  ;;  %v1094_v53 = vld [vmem:[%s2817_s16 + $0xd18] sm:$0xff] }
  0x88   : > { %648 = vmatpush.msrb.mxu0 %v524_v23  ;;  %1232 = vmatpush.msrb.mxu2 %v771_v2  ;;  %v739_v11 = vld [vmem:[%s2817_s16 + $0x200] sm:$0xff]  ;;  %v740_v15 = vld [vmem:[%s2817_s16 + $0x208] sm:$0xff]  ;;  %v821_v2 = vld [vmem:[%s2817_s16 + $0x490] sm:$0xff] }
  0x89   : > { %668 = vmatpush.msrb.mxu1 %v556_v26  ;;  %1251 = vmatpush.msrb.mxu3 %v1043_v57  ;;  %v963_v16 = vld [vmem:[%s2817_s16 + $0x900] sm:$0xff]  ;;  %v964_v18 = vld [vmem:[%s2817_s16 + $0x908] sm:$0xff]  ;;  %v1078_v57 = vld [vmem:[%s2817_s16 + $0xc98] sm:$0xff] }
  0x8a   : > { %1263 = vmatpush.msra.mxu0 %v916_v33  ;;  %1233 = vmatpush.msrb.mxu2 %v755_v7  ;;  %v723_v17 = vld [vmem:[%s2817_s16 + $0x180] sm:$0xff]  ;;  %v724_v19 = vld [vmem:[%s2817_s16 + $0x188] sm:$0xff]  ;;  %v1174_v33 = vld [vmem:[%s2817_s16 + $0xf98] sm:$0xff] }
  0x8b   : > { %1283 = vmatpush.msra.mxu1 %v1172_v28  ;;  %1252 = vmatpush.msrb.mxu3 %v1027_v61  ;;  %v947_v22 = vld [vmem:[%s2817_s16 + $0x880] sm:$0xff]  ;;  %v948_v26 = vld [vmem:[%s2817_s16 + $0x888] sm:$0xff]  ;;  %v1062_v61 = vld [vmem:[%s2817_s16 + $0xc18] sm:$0xff] }
  0x8c   : > { %1264 = vmatpush.msra.mxu0 %v900_v37  ;;  %1234 = vmatpush.msrb.mxu2 %v739_v11  ;;  %v707_v23 = vld [vmem:[%s2817_s16 + $0x100] sm:$0xff]  ;;  %v708_v27 = vld [vmem:[%s2817_s16 + $0x108] sm:$0xff]  ;;  %v1158_v37 = vld [vmem:[%s2817_s16 + $0xf18] sm:$0xff] }
  0x8d   : > { %1284 = vmatpush.msra.mxu1 %v1156_v30  ;;  %1253 = vmatpush.msrb.mxu3 %v1011_v1  ;;  %v931_v30 = vld [vmem:[%s2817_s16 + $0x800] sm:$0xff]  ;;  %v932_v31 = vld [vmem:[%s2817_s16 + $0x808] sm:$0xff]  ;;  %v1046_v1 = vld [vmem:[%s2817_s16 + $0xb98] sm:$0xff] }
  0x8e   : > { %1265 = vmatpush.msra.mxu0 %v884_v40  ;;  %1235 = vmatpush.msrb.mxu2 %v723_v17  ;;  %v692_v35 = vld [vmem:[%s2817_s16 + $0x88] sm:$0xff]  ;;  %v675_v38 = vld [vmem:[%s2817_s16] sm:$0xff]  ;;  %v1141_v40 = vld [vmem:[%s2817_s16 + $0xe90] sm:$0xff] }
  0x8f   : > { %1285 = vmatpush.msra.mxu1 %v1140_v34  ;;  %1254 = vmatpush.msrb.mxu3 %v995_v6  ;;  %v691_v34 = vld [vmem:[%s2817_s16 + $0x80] sm:$0xff]  ;;  %v1030_v5 = vld [vmem:[%s2817_s16 + $0xb18] sm:$0xff]  ;;  %v805_v6 = vld [vmem:[%s2817_s16 + $0x410] sm:$0xff] }
  0x90   : > { %1266 = vmatpush.msra.mxu0 %v868_v44  ;;  %1236 = vmatpush.msrb.mxu2 %v707_v23  ;;  %v1125_v44 = vld [vmem:[%s2817_s16 + $0xe10] sm:$0xff]  ;;  %v806_v7 = vld [vmem:[%s2817_s16 + $0x418] sm:$0xff] }
  0x91   : > { %1286 = vmatpush.msra.mxu1 %v1124_v39  ;;  %1255 = vmatpush.msrb.mxu3 %v979_v10  ;;  %v676_v39 = vld [vmem:[%s2817_s16 + $0x8] sm:$0xff]  ;;  %v789_v10 = vld [vmem:[%s2817_s16 + $0x390] sm:$0xff]  ;;  %v790_v11 = vld [vmem:[%s2817_s16 + $0x398] sm:$0xff] }
  0x92   : > { %1267 = vmatpush.msra.mxu0 %v852_v48  ;;  %1237 = vmatpush.msrb.mxu2 %v691_v34  ;;  %v1109_v48 = vld [vmem:[%s2817_s16 + $0xd90] sm:$0xff]  ;;  %v982_v17 = vld [vmem:[%s2817_s16 + $0x998] sm:$0xff] }
  0x93   : > { %1287 = vmatpush.msra.mxu1 %v1108_v43  ;;  %1256 = vmatpush.msrb.mxu3 %v963_v16  ;;  %v918_v43 = vld [vmem:[%s2817_s16 + $0x798] sm:$0xff]  ;;  %v949_v23 = vld [vmem:[%s2817_s16 + $0x890] sm:$0xff] }
  0x94   : > { %1268 = vmatpush.msra.mxu0 %v836_v52  ;;  %1238 = vmatpush.msrb.mxu2 %v675_v38  ;;  %v1093_v52 = vld [vmem:[%s2817_s16 + $0xd10] sm:$0xff]  ;;  %v774_v16 = vld [vmem:[%s2817_s16 + $0x318] sm:$0xff] }
  0x95   : > { %1288 = vmatpush.msra.mxu1 %v1092_v47  ;;  %1257 = vmatpush.msrb.mxu3 %v947_v22  ;;  %v902_v47 = vld [vmem:[%s2817_s16 + $0x718] sm:$0xff]  ;;  %v741_v22 = vld [vmem:[%s2817_s16 + $0x210] sm:$0xff] }
  0x96   : > { %1269 = vmatpush.msra.mxu0 %v820_v56  ;;  %v1077_v56 = vld [vmem:[%s2817_s16 + $0xc90] sm:$0xff] }
  0x97   : > { %1289 = vmatpush.msra.mxu1 %v1076_v51  ;;  %1258 = vmatpush.msrb.mxu3 %v931_v30  ;;  %v886_v51 = vld [vmem:[%s2817_s16 + $0x698] sm:$0xff]  ;;  %v709_v30 = vld [vmem:[%s2817_s16 + $0x110] sm:$0xff] }
  0x98   : > { %1270 = vmatpush.msra.mxu0 %v804_v60  ;;  %v1061_v60 = vld [vmem:[%s2817_s16 + $0xc10] sm:$0xff] }
  0x99   : > { %1290 = vmatpush.msra.mxu1 %v1060_v55  ;;  %v870_v55 = vld [vmem:[%s2817_s16 + $0x618] sm:$0xff]  ;;  %v677_v34 = vld [vmem:[%s2817_s16 + $0x10] sm:$0xff] }
  0x9a   : > { %1271 = vmatpush.msra.mxu0 %v788_v0  ;;  %v1045_v0 = vld [vmem:[%s2817_s16 + $0xb90] sm:$0xff] }
  0x9b   : > { %1291 = vmatpush.msra.mxu1 %v1044_v59  ;;  %v854_v59 = vld [vmem:[%s2817_s16 + $0x598] sm:$0xff] }
  0x9c   : > { %1272 = vmatpush.msra.mxu0 %v772_v4  ;;  %v1029_v4 = vld [vmem:[%s2817_s16 + $0xb10] sm:$0xff] }
  0x9d   : > { %1292 = vmatpush.msra.mxu1 %v1028_v63  ;;  %v838_v63 = vld [vmem:[%s2817_s16 + $0x518] sm:$0xff] }
  0x9e   : > { %1273 = vmatpush.msra.mxu0 %v756_v9  ;;  %v1014_v9 = vld [vmem:[%s2817_s16 + $0xa98] sm:$0xff] }
  0x9f   : > { %1293 = vmatpush.msra.mxu1 %v1012_v3  ;;  %v822_v3 = vld [vmem:[%s2817_s16 + $0x498] sm:$0xff] }
  0xa0   : > { %1274 = vmatpush.msra.mxu0 %v740_v15  ;;  %v981_v15 = vld [vmem:[%s2817_s16 + $0x990] sm:$0xff] }
  0xa1   : > { %1294 = vmatpush.msra.mxu1 %v996_v8  ;;  %v1013_v8 = vld [vmem:[%s2817_s16 + $0xa90] sm:$0xff] }
  0xa2   : > { %1275 = vmatpush.msra.mxu0 %v724_v19  ;;  %v965_v19 = vld [vmem:[%s2817_s16 + $0x910] sm:$0xff] }
  0xa3   : > { %1295 = vmatpush.msra.mxu1 %v980_v14  ;;  %v773_v14 = vld [vmem:[%s2817_s16 + $0x310] sm:$0xff] }
  0xa4   : > { %1276 = vmatpush.msra.mxu0 %v708_v27  ;;  %v933_v27 = vld [vmem:[%s2817_s16 + $0x810] sm:$0xff] }
  0xa5   : > { %1296 = vmatpush.msra.mxu1 %v964_v18  ;;  %v757_v18 = vld [vmem:[%s2817_s16 + $0x290] sm:$0xff] }
  0xa6   : > { %1277 = vmatpush.msra.mxu0 %v692_v35  ;;  %v678_v35 = vld [vmem:[%s2817_s16 + $0x18] sm:$0xff] }
  0xa7   : > { %1297 = vmatpush.msra.mxu1 %v948_v26  ;;  %v725_v26 = vld [vmem:[%s2817_s16 + $0x190] sm:$0xff] }
  0xa8   : > { %1278 = vmatpush.msra.mxu0 %v676_v39 }
  0xa9   : > { %1298 = vmatpush.msra.mxu1 %v932_v31  ;;  %v710_v31 = vld [vmem:[%s2817_s16 + $0x118] sm:$0xff] }
  0xe6   : > { %v498_v20 = vpop.f32.mrf.mxu0 }
  0xe7   : > { %v518_v21 = vpop.f32.mrf.mxu1  ;;  %v499_v24 = vadd.f32 %v498_v20, %v466_v12  ;;  %v997_v12 = vld [vmem:[%s2817_s16 + $0xa10] sm:$0xff]  ;;  %v758_v20 = vld [vmem:[%s2817_s16 + $0x298] sm:$0xff] }
  0xe8   : > { %v519_v25 = vadd.f32 %v518_v21, %v467_v13  ;;  %v998_v13 = vld [vmem:[%s2817_s16 + $0xa18] sm:$0xff] }
  0xe9   : > { %v521_v28 = vmax.f32 %v499_v24, 0.0  ;;  %v966_v21 = vld [vmem:[%s2817_s16 + $0x918] sm:$0xff] }
  0xea   : > { %v522_v29 = vmax.f32 %v519_v25, 0.0  ;;  %v742_v24 = vld [vmem:[%s2817_s16 + $0x218] sm:$0xff] }
  0xeb   : > { %609 = vmatmul.f32.vlgmr.msra.gmra.mxu2 %v521_v28  ;;  %649 = vmatmul.f32.vlgmr.msrb.gmra.mxu0 %v521_v28  ;;  %v950_v25 = vld [vmem:[%s2817_s16 + $0x898] sm:$0xff] }
  0xec   : > { %629 = vmatmul.f32.vlgmr.msra.gmra.mxu3 %v522_v29  ;;  %669 = vmatmul.f32.vlgmr.msrb.gmra.mxu1 %v522_v29  ;;  %v726_v28 = vld [vmem:[%s2817_s16 + $0x198] sm:$0xff] }
  0xed   : > { %1323 = vmatpush.msra.mxu3 %v1173_v32  ;;  %1363 = vmatpush.msrb.mxu1 %v1174_v33  ;;  %v934_v29 = vld [vmem:[%s2817_s16 + $0x818] sm:$0xff]  ;;  %v693_v32 = vld [vmem:[%s2817_s16 + $0x90] sm:$0xff] }
  0xee   : > { %1303 = vmatpush.msra.mxu2 %v917_v42  ;;  %1343 = vmatpush.msrb.mxu0 %v918_v43  ;;  %v694_v33 = vld [vmem:[%s2817_s16 + $0x98] sm:$0xff] }
  0xef   : > { %1324 = vmatpush.msra.mxu3 %v1157_v36  ;;  %1364 = vmatpush.msrb.mxu1 %v1158_v37  ;;  %v587_v36 = vld [vmem:[#allocation10] sm:$0x3] }
  0xf0   : > { %1304 = vmatpush.msra.mxu2 %v901_v46  ;;  %1344 = vmatpush.msrb.mxu0 %v902_v47  ;;  %v590_v37 = vperm.slane %v587_v36, 1  ;;  %v589_v42 = vperm.slane %v587_v36, 0  ;;  %v951_v36 = vld [vmem:[%s2817_s16 + $0x8a0] sm:$0xff] }
  0xf1   : > { %1325 = vmatpush.msra.mxu3 %v1141_v40  ;;  %1365 = vmatpush.msrb.mxu1 %v1142_v41 }
  0xf2   : > { %1305 = vmatpush.msra.mxu2 %v885_v50  ;;  %1345 = vmatpush.msrb.mxu0 %v886_v51  ;;  %v1160_v50 = vld [vmem:[%s2817_s16 + $0xf28] sm:$0xff] }
  0xf3   : > { %1326 = vmatpush.msra.mxu3 %v1125_v44  ;;  %1366 = vmatpush.msrb.mxu1 %v1126_v45  ;;  %v1175_v44 = vld [vmem:[%s2817_s16 + $0xfa0] sm:$0xff]  ;;  %v1176_v45 = vld [vmem:[%s2817_s16 + $0xfa8] sm:$0xff] }
  0xf4   : > { %1306 = vmatpush.msra.mxu2 %v869_v54  ;;  %1346 = vmatpush.msrb.mxu0 %v870_v55  ;;  %v919_v55 = vld [vmem:[%s2817_s16 + $0x7a0] sm:$0xff] }
  0xf5   : > { %1327 = vmatpush.msra.mxu3 %v1109_v48  ;;  %1367 = vmatpush.msrb.mxu1 %v1110_v49  ;;  %v1159_v49 = vld [vmem:[%s2817_s16 + $0xf20] sm:$0xff] }
  0xf6   : > { %1307 = vmatpush.msra.mxu2 %v853_v58  ;;  %1347 = vmatpush.msrb.mxu0 %v854_v59  ;;  %v1128_v58 = vld [vmem:[%s2817_s16 + $0xe28] sm:$0xff]  ;;  %v903_v59 = vld [vmem:[%s2817_s16 + $0x720] sm:$0xff] }
  0xf7   : > { %1328 = vmatpush.msra.mxu3 %v1093_v52  ;;  %1368 = vmatpush.msrb.mxu1 %v1094_v53  ;;  %v1143_v52 = vld [vmem:[%s2817_s16 + $0xea0] sm:$0xff]  ;;  %v1144_v53 = vld [vmem:[%s2817_s16 + $0xea8] sm:$0xff] }
  0xf8   : > { %1308 = vmatpush.msra.mxu2 %v837_v62  ;;  %1348 = vmatpush.msrb.mxu0 %v838_v63  ;;  %v1112_v62 = vld [vmem:[%s2817_s16 + $0xda8] sm:$0xff]  ;;  %v887_v63 = vld [vmem:[%s2817_s16 + $0x6a0] sm:$0xff] }
  0xf9   : > { %1329 = vmatpush.msra.mxu3 %v1077_v56  ;;  %1369 = vmatpush.msrb.mxu1 %v1078_v57  ;;  %v1127_v56 = vld [vmem:[%s2817_s16 + $0xe20] sm:$0xff]  ;;  %v920_v57 = vld [vmem:[%s2817_s16 + $0x7a8] sm:$0xff] }
  0xfa   : > { %1309 = vmatpush.msra.mxu2 %v821_v2  ;;  %1349 = vmatpush.msrb.mxu0 %v822_v3  ;;  %v1096_v2 = vld [vmem:[%s2817_s16 + $0xd28] sm:$0xff]  ;;  %v871_v3 = vld [vmem:[%s2817_s16 + $0x620] sm:$0xff] }
  0xfb   : > { %1330 = vmatpush.msra.mxu3 %v1061_v60  ;;  %1370 = vmatpush.msrb.mxu1 %v1062_v61  ;;  %v1111_v60 = vld [vmem:[%s2817_s16 + $0xda0] sm:$0xff]  ;;  %v904_v61 = vld [vmem:[%s2817_s16 + $0x728] sm:$0xff] }
  0xfc   : > { %1310 = vmatpush.msra.mxu2 %v805_v6  ;;  %1350 = vmatpush.msrb.mxu0 %v806_v7  ;;  %v1080_v6 = vld [vmem:[%s2817_s16 + $0xca8] sm:$0xff]  ;;  %v855_v7 = vld [vmem:[%s2817_s16 + $0x5a0] sm:$0xff] }
  0xfd   : > { %1331 = vmatpush.msra.mxu3 %v1045_v0  ;;  %1371 = vmatpush.msrb.mxu1 %v1046_v1  ;;  %v1095_v0 = vld [vmem:[%s2817_s16 + $0xd20] sm:$0xff]  ;;  %v888_v1 = vld [vmem:[%s2817_s16 + $0x6a8] sm:$0xff] }
  0xfe   : > { %1311 = vmatpush.msra.mxu2 %v789_v10  ;;  %1351 = vmatpush.msrb.mxu0 %v790_v11  ;;  %v1064_v10 = vld [vmem:[%s2817_s16 + $0xc28] sm:$0xff]  ;;  %v839_v11 = vld [vmem:[%s2817_s16 + $0x520] sm:$0xff] }
  0xff   : > { %1332 = vmatpush.msra.mxu3 %v1029_v4  ;;  %1372 = vmatpush.msrb.mxu1 %v1030_v5  ;;  %v1079_v4 = vld [vmem:[%s2817_s16 + $0xca0] sm:$0xff]  ;;  %v872_v5 = vld [vmem:[%s2817_s16 + $0x628] sm:$0xff] }
 0x100   : > { %1312 = vmatpush.msra.mxu2 %v773_v14  ;;  %1352 = vmatpush.msrb.mxu0 %v774_v16  ;;  %v1048_v14 = vld [vmem:[%s2817_s16 + $0xba8] sm:$0xff]  ;;  %v1031_v16 = vld [vmem:[%s2817_s16 + $0xb20] sm:$0xff] }
 0x101   : > { %1333 = vmatpush.msra.mxu3 %v1013_v8  ;;  %1373 = vmatpush.msrb.mxu1 %v1014_v9  ;;  %v1063_v8 = vld [vmem:[%s2817_s16 + $0xc20] sm:$0xff]  ;;  %v856_v9 = vld [vmem:[%s2817_s16 + $0x5a8] sm:$0xff] }
 0x102   : > { %1313 = vmatpush.msra.mxu2 %v757_v18  ;;  %1353 = vmatpush.msrb.mxu0 %v758_v20  ;;  %v1032_v18 = vld [vmem:[%s2817_s16 + $0xb28] sm:$0xff]  ;;  %v1015_v20 = vld [vmem:[%s2817_s16 + $0xaa0] sm:$0xff] }
 0x103   : > { %1334 = vmatpush.msra.mxu3 %v997_v12  ;;  %1374 = vmatpush.msrb.mxu1 %v998_v13  ;;  %v1047_v12 = vld [vmem:[%s2817_s16 + $0xba0] sm:$0xff]  ;;  %v840_v13 = vld [vmem:[%s2817_s16 + $0x528] sm:$0xff] }
 0x104   : > { %1314 = vmatpush.msra.mxu2 %v741_v22  ;;  %1354 = vmatpush.msrb.mxu0 %v742_v24  ;;  %v1016_v22 = vld [vmem:[%s2817_s16 + $0xaa8] sm:$0xff]  ;;  %v999_v24 = vld [vmem:[%s2817_s16 + $0xa20] sm:$0xff] }
 0x105   : > { %1335 = vmatpush.msra.mxu3 %v981_v15  ;;  %1375 = vmatpush.msrb.mxu1 %v982_v17  ;;  %v823_v15 = vld [vmem:[%s2817_s16 + $0x4a0] sm:$0xff]  ;;  %v824_v17 = vld [vmem:[%s2817_s16 + $0x4a8] sm:$0xff] }
 0x106   : > { %1315 = vmatpush.msra.mxu2 %v725_v26  ;;  %1355 = vmatpush.msrb.mxu0 %v726_v28  ;;  %v1000_v26 = vld [vmem:[%s2817_s16 + $0xa28] sm:$0xff]  ;;  %v983_v28 = vld [vmem:[%s2817_s16 + $0x9a0] sm:$0xff] }
 0x107   : > { %1336 = vmatpush.msra.mxu3 %v965_v19  ;;  %1376 = vmatpush.msrb.mxu1 %v966_v21  ;;  %v807_v19 = vld [vmem:[%s2817_s16 + $0x420] sm:$0xff]  ;;  %v808_v21 = vld [vmem:[%s2817_s16 + $0x428] sm:$0xff] }
 0x108   : > { %1316 = vmatpush.msra.mxu2 %v709_v30  ;;  %1356 = vmatpush.msrb.mxu0 %v710_v31  ;;  %v984_v30 = vld [vmem:[%s2817_s16 + $0x9a8] sm:$0xff]  ;;  %v759_v31 = vld [vmem:[%s2817_s16 + $0x2a0] sm:$0xff] }
 0x109   : > { %1337 = vmatpush.msra.mxu3 %v949_v23  ;;  %1377 = vmatpush.msrb.mxu1 %v950_v25  ;;  %v791_v23 = vld [vmem:[%s2817_s16 + $0x3a0] sm:$0xff]  ;;  %v792_v25 = vld [vmem:[%s2817_s16 + $0x3a8] sm:$0xff] }
 0x10a   : > { %1317 = vmatpush.msra.mxu2 %v693_v32  ;;  %1357 = vmatpush.msrb.mxu0 %v694_v33  ;;  %v967_v32 = vld [vmem:[%s2817_s16 + $0x920] sm:$0xff]  ;;  %v760_v33 = vld [vmem:[%s2817_s16 + $0x2a8] sm:$0xff] }
 0x10b   : > { %1338 = vmatpush.msra.mxu3 %v933_v27  ;;  %1378 = vmatpush.msrb.mxu1 %v934_v29  ;;  %v775_v27 = vld [vmem:[%s2817_s16 + $0x320] sm:$0xff]  ;;  %v776_v29 = vld [vmem:[%s2817_s16 + $0x328] sm:$0xff] }
 0x10c   : > { %1318 = vmatpush.msra.mxu2 %v677_v34  ;;  %1358 = vmatpush.msrb.mxu0 %v678_v35  ;;  %v968_v34 = vld [vmem:[%s2817_s16 + $0x928] sm:$0xff]  ;;  %v743_v35 = vld [vmem:[%s2817_s16 + $0x220] sm:$0xff] }
 0x168   : > { %v650_v38 = vpop.f32.mrf.mxu0 }
 0x169   : > { %v651_v39 = vadd.f32 %v650_v38, %v590_v37  ;;  %v670_v40 = vpop.f32.mrf.mxu1  ;;  %v744_v37 = vld [vmem:[%s2817_s16 + $0x228] sm:$0xff] }
 0x16a   : > { %v952_v38 = vld [vmem:[%s2817_s16 + $0x8a8] sm:$0xff] }
 0x16b   : > { %v671_v41 = vadd.f32 %v670_v40, %v651_v39  ;;  %v727_v39 = vld [vmem:[%s2817_s16 + $0x1a0] sm:$0xff] }
 0x16c   : > { %v935_v40 = vld [vmem:[%s2817_s16 + $0x820] sm:$0xff] }
 0x16d   : > { %v2953_v43 = vmax.f32 %v671_v41, 0.0  ;;  %v728_v41 = vld [vmem:[%s2817_s16 + $0x1a8] sm:$0xff] }
 0x16e   : > { %v610_v46 = vpop.f32.mrf.mxu2 }
 0x16f   : > { %v611_v47 = vadd.f32 %v610_v46, %v589_v42  ;;  %1259 = vmatmul.f32.vlgmr.msrb.gmra.mxu3 %v2953_v43  ;;  %1299 = vmatmul.f32.vlgmr.msra.gmra.mxu1 %v2953_v43  ;;  %v630_v48 = vpop.f32.mrf.mxu3  ;;  %v936_v42 = vld [vmem:[%s2817_s16 + $0x828] sm:$0xff]  ;;  %v711_v46 = vld [vmem:[%s2817_s16 + $0x120] sm:$0xff] }
 0x170   : > { %1403 = vmatpush.msrb.mxu3 %v1175_v44  ;;  %1443 = vmatpush.msra.mxu1 %v1176_v45  ;;  %v1177_v44 = vld [vmem:[%s2817_s16 + $0xfb0] sm:$0xff]  ;;  %v1178_v45 = vld [vmem:[%s2817_s16 + $0xfb8] sm:$0xff] }
 0x171   : > { %v631_v51 = vadd.f32 %v630_v48, %v611_v47  ;;  %v712_v47 = vld [vmem:[%s2817_s16 + $0x128] sm:$0xff]  ;;  %v1161_v48 = vld [vmem:[%s2817_s16 + $0xf30] sm:$0xff] }
 0x172   : > { %1404 = vmatpush.msrb.mxu3 %v1159_v49  ;;  %1444 = vmatpush.msra.mxu1 %v1160_v50  ;;  %v1162_v49 = vld [vmem:[%s2817_s16 + $0xf38] sm:$0xff]  ;;  %v695_v50 = vld [vmem:[%s2817_s16 + $0xa0] sm:$0xff] }
 0x173   : > { %v2963_v54 = vmax.f32 %v631_v51, 0.0  ;;  %v696_v51 = vld [vmem:[%s2817_s16 + $0xa8] sm:$0xff] }
 0x174   : > { %1405 = vmatpush.msrb.mxu3 %v1143_v52  ;;  %1445 = vmatpush.msra.mxu1 %v1144_v53  ;;  %v1145_v52 = vld [vmem:[%s2817_s16 + $0xeb0] sm:$0xff]  ;;  %v1146_v53 = vld [vmem:[%s2817_s16 + $0xeb8] sm:$0xff] }
 0x175   : > { %1239 = vmatmul.f32.vlgmr.msrb.gmra.mxu2 %v2963_v54  ;;  %1279 = vmatmul.f32.vlgmr.msra.gmra.mxu0 %v2963_v54 }
 0x176   : > { %1383 = vmatpush.msrb.mxu2 %v919_v55  ;;  %1406 = vmatpush.msrb.mxu3 %v1127_v56  ;;  %v679_v55 = vld [vmem:[%s2817_s16 + $0x20] sm:$0xff]  ;;  %v680_v56 = vld [vmem:[%s2817_s16 + $0x28] sm:$0xff] }
 0x177   : > { %1423 = vmatpush.msra.mxu0 %v920_v57  ;;  %1446 = vmatpush.msra.mxu1 %v1128_v58  ;;  %v921_v57 = vld [vmem:[%s2817_s16 + $0x7b0] sm:$0xff] }
 0x178   : > { %1339 = vmatmul.f32.vlgmr.msra.gmra.mxu3 %v2953_v43  ;;  %1379 = vmatmul.f32.vlgmr.msrb.gmra.mxu1 %v2953_v43  ;;  %v1129_v58 = vld [vmem:[%s2817_s16 + $0xe30] sm:$0xff] }
 0x179   : > { %1384 = vmatpush.msrb.mxu2 %v903_v59  ;;  %1407 = vmatpush.msrb.mxu3 %v1111_v60  ;;  %v922_v59 = vld [vmem:[%s2817_s16 + $0x7b8] sm:$0xff] }
 0x17a   : > { %1424 = vmatpush.msra.mxu0 %v904_v61  ;;  %1447 = vmatpush.msra.mxu1 %v1112_v62  ;;  %v1130_v60 = vld [vmem:[%s2817_s16 + $0xe38] sm:$0xff]  ;;  %v905_v61 = vld [vmem:[%s2817_s16 + $0x730] sm:$0xff] }
 0x17b   : > { %1385 = vmatpush.msrb.mxu2 %v887_v63  ;;  %1408 = vmatpush.msrb.mxu3 %v1095_v0  ;;  %v1113_v62 = vld [vmem:[%s2817_s16 + $0xdb0] sm:$0xff]  ;;  %v906_v63 = vld [vmem:[%s2817_s16 + $0x738] sm:$0xff] }
 0x17c   : > { %1425 = vmatpush.msra.mxu0 %v888_v1  ;;  %1448 = vmatpush.msra.mxu1 %v1096_v2  ;;  %v1114_v0 = vld [vmem:[%s2817_s16 + $0xdb8] sm:$0xff]  ;;  %v889_v1 = vld [vmem:[%s2817_s16 + $0x6b0] sm:$0xff] }
 0x17d   : > { %1386 = vmatpush.msrb.mxu2 %v871_v3  ;;  %1409 = vmatpush.msrb.mxu3 %v1079_v4  ;;  %v1097_v2 = vld [vmem:[%s2817_s16 + $0xd30] sm:$0xff]  ;;  %v890_v3 = vld [vmem:[%s2817_s16 + $0x6b8] sm:$0xff] }
 0x17e   : > { %1426 = vmatpush.msra.mxu0 %v872_v5  ;;  %1449 = vmatpush.msra.mxu1 %v1080_v6  ;;  %v1098_v4 = vld [vmem:[%s2817_s16 + $0xd38] sm:$0xff]  ;;  %v873_v5 = vld [vmem:[%s2817_s16 + $0x630] sm:$0xff] }
 0x17f   : > { %1319 = vmatmul.f32.vlgmr.msra.gmra.mxu2 %v2963_v54  ;;  %1359 = vmatmul.f32.vlgmr.msrb.gmra.mxu0 %v2963_v54  ;;  %v1081_v6 = vld [vmem:[%s2817_s16 + $0xcb0] sm:$0xff] }
 0x180   : > { %1387 = vmatpush.msrb.mxu2 %v855_v7  ;;  %1410 = vmatpush.msrb.mxu3 %v1063_v8  ;;  %v874_v7 = vld [vmem:[%s2817_s16 + $0x638] sm:$0xff] }
 0x181   : > { %1427 = vmatpush.msra.mxu0 %v856_v9  ;;  %1450 = vmatpush.msra.mxu1 %v1064_v10  ;;  %v1082_v8 = vld [vmem:[%s2817_s16 + $0xcb8] sm:$0xff]  ;;  %v857_v9 = vld [vmem:[%s2817_s16 + $0x5b0] sm:$0xff] }
 0x182   : > { %1388 = vmatpush.msrb.mxu2 %v839_v11  ;;  %1411 = vmatpush.msrb.mxu3 %v1047_v12  ;;  %v1065_v10 = vld [vmem:[%s2817_s16 + $0xc30] sm:$0xff]  ;;  %v858_v11 = vld [vmem:[%s2817_s16 + $0x5b8] sm:$0xff] }
 0x183   : > { %1428 = vmatpush.msra.mxu0 %v840_v13  ;;  %1451 = vmatpush.msra.mxu1 %v1048_v14  ;;  %v1066_v12 = vld [vmem:[%s2817_s16 + $0xc38] sm:$0xff]  ;;  %v841_v13 = vld [vmem:[%s2817_s16 + $0x530] sm:$0xff] }
 0x184   : > { %1389 = vmatpush.msrb.mxu2 %v823_v15  ;;  %1412 = vmatpush.msrb.mxu3 %v1031_v16  ;;  %v1049_v14 = vld [vmem:[%s2817_s16 + $0xbb0] sm:$0xff]  ;;  %v842_v15 = vld [vmem:[%s2817_s16 + $0x538] sm:$0xff] }
 0x185   : > { %1429 = vmatpush.msra.mxu0 %v824_v17  ;;  %1452 = vmatpush.msra.mxu1 %v1032_v18  ;;  %v1050_v16 = vld [vmem:[%s2817_s16 + $0xbb8] sm:$0xff]  ;;  %v825_v17 = vld [vmem:[%s2817_s16 + $0x4b0] sm:$0xff] }
 0x186   : > { %1390 = vmatpush.msrb.mxu2 %v807_v19  ;;  %1413 = vmatpush.msrb.mxu3 %v1015_v20  ;;  %v1033_v18 = vld [vmem:[%s2817_s16 + $0xb30] sm:$0xff]  ;;  %v826_v19 = vld [vmem:[%s2817_s16 + $0x4b8] sm:$0xff] }
 0x187   : > { %1430 = vmatpush.msra.mxu0 %v808_v21  ;;  %1453 = vmatpush.msra.mxu1 %v1016_v22  ;;  %v1034_v20 = vld [vmem:[%s2817_s16 + $0xb38] sm:$0xff]  ;;  %v809_v21 = vld [vmem:[%s2817_s16 + $0x430] sm:$0xff] }
 0x188   : > { %1391 = vmatpush.msrb.mxu2 %v791_v23  ;;  %1414 = vmatpush.msrb.mxu3 %v999_v24  ;;  %v1017_v22 = vld [vmem:[%s2817_s16 + $0xab0] sm:$0xff]  ;;  %v810_v23 = vld [vmem:[%s2817_s16 + $0x438] sm:$0xff] }
 0x189   : > { %1431 = vmatpush.msra.mxu0 %v792_v25  ;;  %1454 = vmatpush.msra.mxu1 %v1000_v26  ;;  %v1018_v24 = vld [vmem:[%s2817_s16 + $0xab8] sm:$0xff]  ;;  %v793_v25 = vld [vmem:[%s2817_s16 + $0x3b0] sm:$0xff] }
 0x18a   : > { %1392 = vmatpush.msrb.mxu2 %v775_v27  ;;  %1415 = vmatpush.msrb.mxu3 %v983_v28  ;;  %v1001_v26 = vld [vmem:[%s2817_s16 + $0xa30] sm:$0xff]  ;;  %v794_v27 = vld [vmem:[%s2817_s16 + $0x3b8] sm:$0xff] }
 0x18b   : > { %1432 = vmatpush.msra.mxu0 %v776_v29  ;;  %1455 = vmatpush.msra.mxu1 %v984_v30  ;;  %v1002_v28 = vld [vmem:[%s2817_s16 + $0xa38] sm:$0xff]  ;;  %v777_v29 = vld [vmem:[%s2817_s16 + $0x330] sm:$0xff] }
 0x18c   : > { %1393 = vmatpush.msrb.mxu2 %v759_v31  ;;  %1416 = vmatpush.msrb.mxu3 %v967_v32  ;;  %v985_v30 = vld [vmem:[%s2817_s16 + $0x9b0] sm:$0xff]  ;;  %v778_v31 = vld [vmem:[%s2817_s16 + $0x338] sm:$0xff] }
 0x18d   : > { %1433 = vmatpush.msra.mxu0 %v760_v33  ;;  %1456 = vmatpush.msra.mxu1 %v968_v34  ;;  %v986_v32 = vld [vmem:[%s2817_s16 + $0x9b8] sm:$0xff]  ;;  %v761_v33 = vld [vmem:[%s2817_s16 + $0x2b0] sm:$0xff] }
 0x18e   : > { %1394 = vmatpush.msrb.mxu2 %v743_v35  ;;  %1417 = vmatpush.msrb.mxu3 %v951_v36  ;;  %v969_v34 = vld [vmem:[%s2817_s16 + $0x930] sm:$0xff]  ;;  %v762_v35 = vld [vmem:[%s2817_s16 + $0x2b8] sm:$0xff] }
 0x18f   : > { %1434 = vmatpush.msra.mxu0 %v744_v37  ;;  %1457 = vmatpush.msra.mxu1 %v952_v38  ;;  %v970_v36 = vld [vmem:[%s2817_s16 + $0x938] sm:$0xff]  ;;  %v745_v37 = vld [vmem:[%s2817_s16 + $0x230] sm:$0xff] }
 0x190   : > { %1395 = vmatpush.msrb.mxu2 %v727_v39  ;;  %1418 = vmatpush.msrb.mxu3 %v935_v40  ;;  %v953_v38 = vld [vmem:[%s2817_s16 + $0x8b0] sm:$0xff]  ;;  %v746_v39 = vld [vmem:[%s2817_s16 + $0x238] sm:$0xff] }
 0x191   : > { %1435 = vmatpush.msra.mxu0 %v728_v41  ;;  %1458 = vmatpush.msra.mxu1 %v936_v42  ;;  %v954_v40 = vld [vmem:[%s2817_s16 + $0x8b8] sm:$0xff]  ;;  %v729_v41 = vld [vmem:[%s2817_s16 + $0x1b0] sm:$0xff] }
 0x192   : > { %1419 = vmatmul.f32.vlgmr.msrb.gmra.mxu3 %v2953_v43  ;;  %1459 = vmatmul.f32.vlgmr.msra.gmra.mxu1 %v2953_v43  ;;  %v937_v42 = vld [vmem:[%s2817_s16 + $0x830] sm:$0xff] }
 0x193   : > { %1483 = vmatpush.msra.mxu3 %v1177_v44  ;;  %1523 = vmatpush.msrb.mxu1 %v1178_v45  ;;  %v730_v44 = vld [vmem:[%s2817_s16 + $0x1b8] sm:$0xff] }
 0x194   : > { %1396 = vmatpush.msrb.mxu2 %v711_v46  ;;  %1436 = vmatpush.msra.mxu0 %v712_v47  ;;  %v938_v45 = vld [vmem:[%s2817_s16 + $0x838] sm:$0xff]  ;;  %v1179_v46 = vld [vmem:[%s2817_s16 + $0xfc0] sm:$0xff]  ;;  %v1180_v47 = vld [vmem:[%s2817_s16 + $0xfc8] sm:$0xff] }
 0x195   : > { %1484 = vmatpush.msra.mxu3 %v1161_v48  ;;  %1524 = vmatpush.msrb.mxu1 %v1162_v49  ;;  %v713_v48 = vld [vmem:[%s2817_s16 + $0x130] sm:$0xff]  ;;  %v714_v49 = vld [vmem:[%s2817_s16 + $0x138] sm:$0xff] }
 0x196   : > { %1397 = vmatpush.msrb.mxu2 %v695_v50  ;;  %1437 = vmatpush.msra.mxu0 %v696_v51  ;;  %v1163_v50 = vld [vmem:[%s2817_s16 + $0xf40] sm:$0xff]  ;;  %v1164_v51 = vld [vmem:[%s2817_s16 + $0xf48] sm:$0xff] }
 0x197   : > { %1485 = vmatpush.msra.mxu3 %v1145_v52  ;;  %1525 = vmatpush.msrb.mxu1 %v1146_v53  ;;  %v697_v52 = vld [vmem:[%s2817_s16 + $0xb0] sm:$0xff]  ;;  %v698_v53 = vld [vmem:[%s2817_s16 + $0xb8] sm:$0xff] }
 0x198   : > { %1398 = vmatpush.msrb.mxu2 %v679_v55  ;;  %1438 = vmatpush.msra.mxu0 %v680_v56  ;;  %v1147_v55 = vld [vmem:[%s2817_s16 + $0xec0] sm:$0xff]  ;;  %v1148_v56 = vld [vmem:[%s2817_s16 + $0xec8] sm:$0xff] }
 0x199   : > { %1399 = vmatmul.f32.vlgmr.msrb.gmra.mxu2 %v2963_v54  ;;  %1439 = vmatmul.f32.vlgmr.msra.gmra.mxu0 %v2963_v54 }
 0x19a   : > { %1463 = vmatpush.msra.mxu2 %v921_v57  ;;  %1486 = vmatpush.msra.mxu3 %v1129_v58  ;;  %v681_v57 = vld [vmem:[%s2817_s16 + $0x30] sm:$0xff]  ;;  %v682_v58 = vld [vmem:[%s2817_s16 + $0x38] sm:$0xff] }
 0x19b   : > { %1503 = vmatpush.msrb.mxu0 %v922_v59  ;;  %1526 = vmatpush.msrb.mxu1 %v1130_v60  ;;  %v923_v59 = vld [vmem:[%s2817_s16 + $0x7c0] sm:$0xff] }
 0x19c   : > { %1464 = vmatpush.msra.mxu2 %v905_v61  ;;  %1487 = vmatpush.msra.mxu3 %v1113_v62  ;;  %v1131_v60 = vld [vmem:[%s2817_s16 + $0xe40] sm:$0xff]  ;;  %v924_v61 = vld [vmem:[%s2817_s16 + $0x7c8] sm:$0xff] }
 0x19d   : > { %1504 = vmatpush.msrb.mxu0 %v906_v63  ;;  %1527 = vmatpush.msrb.mxu1 %v1114_v0  ;;  %v1132_v62 = vld [vmem:[%s2817_s16 + $0xe48] sm:$0xff]  ;;  %v907_v63 = vld [vmem:[%s2817_s16 + $0x740] sm:$0xff] }
 0x19e   : > { %1465 = vmatpush.msra.mxu2 %v889_v1  ;;  %1488 = vmatpush.msra.mxu3 %v1097_v2  ;;  %v1115_v0 = vld [vmem:[%s2817_s16 + $0xdc0] sm:$0xff]  ;;  %v908_v1 = vld [vmem:[%s2817_s16 + $0x748] sm:$0xff] }
 0x19f   : > { %1505 = vmatpush.msrb.mxu0 %v890_v3  ;;  %1528 = vmatpush.msrb.mxu1 %v1098_v4  ;;  %v1116_v2 = vld [vmem:[%s2817_s16 + $0xdc8] sm:$0xff]  ;;  %v891_v3 = vld [vmem:[%s2817_s16 + $0x6c0] sm:$0xff] }
 0x1a0   : > { %1466 = vmatpush.msra.mxu2 %v873_v5  ;;  %1489 = vmatpush.msra.mxu3 %v1081_v6  ;;  %v1099_v4 = vld [vmem:[%s2817_s16 + $0xd40] sm:$0xff]  ;;  %v892_v5 = vld [vmem:[%s2817_s16 + $0x6c8] sm:$0xff] }
 0x1a1   : > { %1506 = vmatpush.msrb.mxu0 %v874_v7  ;;  %1529 = vmatpush.msrb.mxu1 %v1082_v8  ;;  %v1100_v6 = vld [vmem:[%s2817_s16 + $0xd48] sm:$0xff]  ;;  %v875_v7 = vld [vmem:[%s2817_s16 + $0x640] sm:$0xff] }
 0x1a2   : > { %1467 = vmatpush.msra.mxu2 %v857_v9  ;;  %1490 = vmatpush.msra.mxu3 %v1065_v10  ;;  %v1083_v8 = vld [vmem:[%s2817_s16 + $0xcc0] sm:$0xff]  ;;  %v876_v9 = vld [vmem:[%s2817_s16 + $0x648] sm:$0xff] }
 0x1a3   : > { %1507 = vmatpush.msrb.mxu0 %v858_v11  ;;  %1530 = vmatpush.msrb.mxu1 %v1066_v12  ;;  %v1084_v10 = vld [vmem:[%s2817_s16 + $0xcc8] sm:$0xff]  ;;  %v859_v11 = vld [vmem:[%s2817_s16 + $0x5c0] sm:$0xff] }
 0x1a4   : > { %1468 = vmatpush.msra.mxu2 %v841_v13  ;;  %1491 = vmatpush.msra.mxu3 %v1049_v14  ;;  %v1067_v12 = vld [vmem:[%s2817_s16 + $0xc40] sm:$0xff]  ;;  %v860_v13 = vld [vmem:[%s2817_s16 + $0x5c8] sm:$0xff] }
 0x1a5   : > { %1508 = vmatpush.msrb.mxu0 %v842_v15  ;;  %1531 = vmatpush.msrb.mxu1 %v1050_v16  ;;  %v1068_v14 = vld [vmem:[%s2817_s16 + $0xc48] sm:$0xff]  ;;  %v843_v15 = vld [vmem:[%s2817_s16 + $0x540] sm:$0xff] }
 0x1a6   : > { %1469 = vmatpush.msra.mxu2 %v825_v17  ;;  %1492 = vmatpush.msra.mxu3 %v1033_v18  ;;  %v1051_v16 = vld [vmem:[%s2817_s16 + $0xbc0] sm:$0xff]  ;;  %v844_v17 = vld [vmem:[%s2817_s16 + $0x548] sm:$0xff] }
 0x1a7   : > { %1509 = vmatpush.msrb.mxu0 %v826_v19  ;;  %1532 = vmatpush.msrb.mxu1 %v1034_v20  ;;  %v1052_v18 = vld [vmem:[%s2817_s16 + $0xbc8] sm:$0xff]  ;;  %v827_v19 = vld [vmem:[%s2817_s16 + $0x4c0] sm:$0xff] }
 0x1a8   : > { %1470 = vmatpush.msra.mxu2 %v809_v21  ;;  %1493 = vmatpush.msra.mxu3 %v1017_v22  ;;  %v1035_v20 = vld [vmem:[%s2817_s16 + $0xb40] sm:$0xff]  ;;  %v828_v21 = vld [vmem:[%s2817_s16 + $0x4c8] sm:$0xff] }
 0x1a9   : > { %1510 = vmatpush.msrb.mxu0 %v810_v23  ;;  %1533 = vmatpush.msrb.mxu1 %v1018_v24  ;;  %v1036_v22 = vld [vmem:[%s2817_s16 + $0xb48] sm:$0xff]  ;;  %v811_v23 = vld [vmem:[%s2817_s16 + $0x440] sm:$0xff] }
 0x1aa   : > { %1471 = vmatpush.msra.mxu2 %v793_v25  ;;  %1494 = vmatpush.msra.mxu3 %v1001_v26  ;;  %v1019_v24 = vld [vmem:[%s2817_s16 + $0xac0] sm:$0xff]  ;;  %v812_v25 = vld [vmem:[%s2817_s16 + $0x448] sm:$0xff] }
 0x1ab   : > { %1511 = vmatpush.msrb.mxu0 %v794_v27  ;;  %1534 = vmatpush.msrb.mxu1 %v1002_v28  ;;  %v1020_v26 = vld [vmem:[%s2817_s16 + $0xac8] sm:$0xff]  ;;  %v795_v27 = vld [vmem:[%s2817_s16 + $0x3c0] sm:$0xff] }
 0x1ac   : > { %1472 = vmatpush.msra.mxu2 %v777_v29  ;;  %1495 = vmatpush.msra.mxu3 %v985_v30  ;;  %v1003_v28 = vld [vmem:[%s2817_s16 + $0xa40] sm:$0xff]  ;;  %v796_v29 = vld [vmem:[%s2817_s16 + $0x3c8] sm:$0xff] }
 0x1ad   : > { %1512 = vmatpush.msrb.mxu0 %v778_v31  ;;  %1535 = vmatpush.msrb.mxu1 %v986_v32  ;;  %v1004_v30 = vld [vmem:[%s2817_s16 + $0xa48] sm:$0xff]  ;;  %v779_v31 = vld [vmem:[%s2817_s16 + $0x340] sm:$0xff] }
 0x1ae   : > { %1473 = vmatpush.msra.mxu2 %v761_v33  ;;  %1496 = vmatpush.msra.mxu3 %v969_v34  ;;  %v987_v32 = vld [vmem:[%s2817_s16 + $0x9c0] sm:$0xff]  ;;  %v780_v33 = vld [vmem:[%s2817_s16 + $0x348] sm:$0xff] }
 0x1af   : > { %1513 = vmatpush.msrb.mxu0 %v762_v35  ;;  %1536 = vmatpush.msrb.mxu1 %v970_v36  ;;  %v988_v34 = vld [vmem:[%s2817_s16 + $0x9c8] sm:$0xff]  ;;  %v763_v35 = vld [vmem:[%s2817_s16 + $0x2c0] sm:$0xff] }
 0x1b0   : > { %1474 = vmatpush.msra.mxu2 %v745_v37  ;;  %1497 = vmatpush.msra.mxu3 %v953_v38  ;;  %v971_v36 = vld [vmem:[%s2817_s16 + $0x940] sm:$0xff]  ;;  %v764_v37 = vld [vmem:[%s2817_s16 + $0x2c8] sm:$0xff] }
 0x1b1   : > { %1514 = vmatpush.msrb.mxu0 %v746_v39  ;;  %1537 = vmatpush.msrb.mxu1 %v954_v40  ;;  %v972_v38 = vld [vmem:[%s2817_s16 + $0x948] sm:$0xff]  ;;  %v747_v39 = vld [vmem:[%s2817_s16 + $0x240] sm:$0xff] }
 0x1b2   : > { %1475 = vmatpush.msra.mxu2 %v729_v41  ;;  %1498 = vmatpush.msra.mxu3 %v937_v42  ;;  %v955_v40 = vld [vmem:[%s2817_s16 + $0x8c0] sm:$0xff]  ;;  %v748_v41 = vld [vmem:[%s2817_s16 + $0x248] sm:$0xff] }
 0x1b3   : > { %1515 = vmatpush.msrb.mxu0 %v730_v44  ;;  %1538 = vmatpush.msrb.mxu1 %v938_v45  ;;  %v956_v42 = vld [vmem:[%s2817_s16 + $0x8c8] sm:$0xff]  ;;  %v731_v44 = vld [vmem:[%s2817_s16 + $0x1c0] sm:$0xff] }
 0x1b4   : > { %1499 = vmatmul.f32.vlgmr.msra.gmra.mxu3 %v2953_v43  ;;  %1539 = vmatmul.f32.vlgmr.msrb.gmra.mxu1 %v2953_v43  ;;  %v939_v45 = vld [vmem:[%s2817_s16 + $0x840] sm:$0xff] }
 0x1b5   : > { %1563 = vmatpush.msrb.mxu3 %v1179_v46  ;;  %1603 = vmatpush.msra.mxu1 %v1180_v47  ;;  %v732_v46 = vld [vmem:[%s2817_s16 + $0x1c8] sm:$0xff] }
 0x1b6   : > { %1476 = vmatpush.msra.mxu2 %v713_v48  ;;  %1516 = vmatpush.msrb.mxu0 %v714_v49  ;;  %v940_v47 = vld [vmem:[%s2817_s16 + $0x848] sm:$0xff]  ;;  %v1181_v48 = vld [vmem:[%s2817_s16 + $0xfd0] sm:$0xff]  ;;  %v1182_v49 = vld [vmem:[%s2817_s16 + $0xfd8] sm:$0xff] }
 0x1b7   : > { %1564 = vmatpush.msrb.mxu3 %v1163_v50  ;;  %1604 = vmatpush.msra.mxu1 %v1164_v51  ;;  %v715_v50 = vld [vmem:[%s2817_s16 + $0x140] sm:$0xff]  ;;  %v716_v51 = vld [vmem:[%s2817_s16 + $0x148] sm:$0xff] }
 0x1b8   : > { %1477 = vmatpush.msra.mxu2 %v697_v52  ;;  %1517 = vmatpush.msrb.mxu0 %v698_v53  ;;  %v1165_v52 = vld [vmem:[%s2817_s16 + $0xf50] sm:$0xff]  ;;  %v1166_v53 = vld [vmem:[%s2817_s16 + $0xf58] sm:$0xff] }
 0x1b9   : > { %1565 = vmatpush.msrb.mxu3 %v1147_v55  ;;  %1605 = vmatpush.msra.mxu1 %v1148_v56  ;;  %v699_v55 = vld [vmem:[%s2817_s16 + $0xc0] sm:$0xff]  ;;  %v700_v56 = vld [vmem:[%s2817_s16 + $0xc8] sm:$0xff] }
 0x1ba   : > { %1478 = vmatpush.msra.mxu2 %v681_v57  ;;  %1518 = vmatpush.msrb.mxu0 %v682_v58  ;;  %v1149_v57 = vld [vmem:[%s2817_s16 + $0xed0] sm:$0xff]  ;;  %v1150_v58 = vld [vmem:[%s2817_s16 + $0xed8] sm:$0xff] }
 0x1bb   : > { %1479 = vmatmul.f32.vlgmr.msra.gmra.mxu2 %v2963_v54  ;;  %1519 = vmatmul.f32.vlgmr.msrb.gmra.mxu0 %v2963_v54 }
 0x1bc   : > { %1543 = vmatpush.msrb.mxu2 %v923_v59  ;;  %1566 = vmatpush.msrb.mxu3 %v1131_v60  ;;  %v683_v59 = vld [vmem:[%s2817_s16 + $0x40] sm:$0xff]  ;;  %v684_v60 = vld [vmem:[%s2817_s16 + $0x48] sm:$0xff] }
 0x1bd   : > { %1583 = vmatpush.msra.mxu0 %v924_v61  ;;  %1606 = vmatpush.msra.mxu1 %v1132_v62  ;;  %v925_v61 = vld [vmem:[%s2817_s16 + $0x7d0] sm:$0xff] }
 0x1be   : > { %1544 = vmatpush.msrb.mxu2 %v907_v63  ;;  %1567 = vmatpush.msrb.mxu3 %v1115_v0  ;;  %v1133_v62 = vld [vmem:[%s2817_s16 + $0xe50] sm:$0xff]  ;;  %v926_v63 = vld [vmem:[%s2817_s16 + $0x7d8] sm:$0xff] }
 0x1bf   : > { %1584 = vmatpush.msra.mxu0 %v908_v1  ;;  %1607 = vmatpush.msra.mxu1 %v1116_v2  ;;  %v1134_v0 = vld [vmem:[%s2817_s16 + $0xe58] sm:$0xff]  ;;  %v909_v1 = vld [vmem:[%s2817_s16 + $0x750] sm:$0xff] }
 0x1c0   : > { %1545 = vmatpush.msrb.mxu2 %v891_v3  ;;  %1568 = vmatpush.msrb.mxu3 %v1099_v4  ;;  %v1117_v2 = vld [vmem:[%s2817_s16 + $0xdd0] sm:$0xff]  ;;  %v910_v3 = vld [vmem:[%s2817_s16 + $0x758] sm:$0xff] }
 0x1c1   : > { %1585 = vmatpush.msra.mxu0 %v892_v5  ;;  %1608 = vmatpush.msra.mxu1 %v1100_v6  ;;  %v1118_v4 = vld [vmem:[%s2817_s16 + $0xdd8] sm:$0xff]  ;;  %v893_v5 = vld [vmem:[%s2817_s16 + $0x6d0] sm:$0xff] }
 0x1c2   : > { %1546 = vmatpush.msrb.mxu2 %v875_v7  ;;  %1569 = vmatpush.msrb.mxu3 %v1083_v8  ;;  %v1101_v6 = vld [vmem:[%s2817_s16 + $0xd50] sm:$0xff]  ;;  %v894_v7 = vld [vmem:[%s2817_s16 + $0x6d8] sm:$0xff] }
 0x1c3   : > { %1586 = vmatpush.msra.mxu0 %v876_v9  ;;  %1609 = vmatpush.msra.mxu1 %v1084_v10  ;;  %v1102_v8 = vld [vmem:[%s2817_s16 + $0xd58] sm:$0xff]  ;;  %v877_v9 = vld [vmem:[%s2817_s16 + $0x650] sm:$0xff] }
 0x1c4   : > { %1547 = vmatpush.msrb.mxu2 %v859_v11  ;;  %1570 = vmatpush.msrb.mxu3 %v1067_v12  ;;  %v1085_v10 = vld [vmem:[%s2817_s16 + $0xcd0] sm:$0xff]  ;;  %v878_v11 = vld [vmem:[%s2817_s16 + $0x658] sm:$0xff] }
 0x1c5   : > { %1587 = vmatpush.msra.mxu0 %v860_v13  ;;  %1610 = vmatpush.msra.mxu1 %v1068_v14  ;;  %v1086_v12 = vld [vmem:[%s2817_s16 + $0xcd8] sm:$0xff]  ;;  %v861_v13 = vld [vmem:[%s2817_s16 + $0x5d0] sm:$0xff] }
 0x1c6   : > { %1548 = vmatpush.msrb.mxu2 %v843_v15  ;;  %1571 = vmatpush.msrb.mxu3 %v1051_v16  ;;  %v1069_v14 = vld [vmem:[%s2817_s16 + $0xc50] sm:$0xff]  ;;  %v862_v15 = vld [vmem:[%s2817_s16 + $0x5d8] sm:$0xff] }
 0x1c7   : > { %1588 = vmatpush.msra.mxu0 %v844_v17  ;;  %1611 = vmatpush.msra.mxu1 %v1052_v18  ;;  %v1070_v16 = vld [vmem:[%s2817_s16 + $0xc58] sm:$0xff]  ;;  %v845_v17 = vld [vmem:[%s2817_s16 + $0x550] sm:$0xff] }
 0x1c8   : > { %1549 = vmatpush.msrb.mxu2 %v827_v19  ;;  %1572 = vmatpush.msrb.mxu3 %v1035_v20  ;;  %v1053_v18 = vld [vmem:[%s2817_s16 + $0xbd0] sm:$0xff]  ;;  %v846_v19 = vld [vmem:[%s2817_s16 + $0x558] sm:$0xff] }
 0x1c9   : > { %1589 = vmatpush.msra.mxu0 %v828_v21  ;;  %1612 = vmatpush.msra.mxu1 %v1036_v22  ;;  %v1054_v20 = vld [vmem:[%s2817_s16 + $0xbd8] sm:$0xff]  ;;  %v829_v21 = vld [vmem:[%s2817_s16 + $0x4d0] sm:$0xff] }
 0x1ca   : > { %1550 = vmatpush.msrb.mxu2 %v811_v23  ;;  %1573 = vmatpush.msrb.mxu3 %v1019_v24  ;;  %v1037_v22 = vld [vmem:[%s2817_s16 + $0xb50] sm:$0xff]  ;;  %v830_v23 = vld [vmem:[%s2817_s16 + $0x4d8] sm:$0xff] }
 0x1cb   : > { %1590 = vmatpush.msra.mxu0 %v812_v25  ;;  %1613 = vmatpush.msra.mxu1 %v1020_v26  ;;  %v1038_v24 = vld [vmem:[%s2817_s16 + $0xb58] sm:$0xff]  ;;  %v813_v25 = vld [vmem:[%s2817_s16 + $0x450] sm:$0xff] }
 0x1cc   : > { %1551 = vmatpush.msrb.mxu2 %v795_v27  ;;  %1574 = vmatpush.msrb.mxu3 %v1003_v28  ;;  %v1021_v26 = vld [vmem:[%s2817_s16 + $0xad0] sm:$0xff]  ;;  %v814_v27 = vld [vmem:[%s2817_s16 + $0x458] sm:$0xff] }
 0x1cd   : > { %1591 = vmatpush.msra.mxu0 %v796_v29  ;;  %1614 = vmatpush.msra.mxu1 %v1004_v30  ;;  %v1022_v28 = vld [vmem:[%s2817_s16 + $0xad8] sm:$0xff]  ;;  %v797_v29 = vld [vmem:[%s2817_s16 + $0x3d0] sm:$0xff] }
 0x1ce   : > { %1552 = vmatpush.msrb.mxu2 %v779_v31  ;;  %1575 = vmatpush.msrb.mxu3 %v987_v32  ;;  %v1005_v30 = vld [vmem:[%s2817_s16 + $0xa50] sm:$0xff]  ;;  %v798_v31 = vld [vmem:[%s2817_s16 + $0x3d8] sm:$0xff] }
 0x1cf   : > { %1592 = vmatpush.msra.mxu0 %v780_v33  ;;  %1615 = vmatpush.msra.mxu1 %v988_v34  ;;  %v1006_v32 = vld [vmem:[%s2817_s16 + $0xa58] sm:$0xff]  ;;  %v781_v33 = vld [vmem:[%s2817_s16 + $0x350] sm:$0xff] }
 0x1d0   : > { %1553 = vmatpush.msrb.mxu2 %v763_v35  ;;  %1576 = vmatpush.msrb.mxu3 %v971_v36  ;;  %v989_v34 = vld [vmem:[%s2817_s16 + $0x9d0] sm:$0xff]  ;;  %v782_v35 = vld [vmem:[%s2817_s16 + $0x358] sm:$0xff] }
 0x1d1   : > { %1593 = vmatpush.msra.mxu0 %v764_v37  ;;  %1616 = vmatpush.msra.mxu1 %v972_v38  ;;  %v990_v36 = vld [vmem:[%s2817_s16 + $0x9d8] sm:$0xff]  ;;  %v765_v37 = vld [vmem:[%s2817_s16 + $0x2d0] sm:$0xff] }
 0x1d2   : > { %1554 = vmatpush.msrb.mxu2 %v747_v39  ;;  %1577 = vmatpush.msrb.mxu3 %v955_v40  ;;  %v973_v38 = vld [vmem:[%s2817_s16 + $0x950] sm:$0xff]  ;;  %v766_v39 = vld [vmem:[%s2817_s16 + $0x2d8] sm:$0xff] }
 0x1d3   : > { %1594 = vmatpush.msra.mxu0 %v748_v41  ;;  %1617 = vmatpush.msra.mxu1 %v956_v42  ;;  %v974_v40 = vld [vmem:[%s2817_s16 + $0x958] sm:$0xff]  ;;  %v749_v41 = vld [vmem:[%s2817_s16 + $0x250] sm:$0xff] }
 0x1d4   : > { %1555 = vmatpush.msrb.mxu2 %v731_v44  ;;  %1578 = vmatpush.msrb.mxu3 %v939_v45  ;;  %v957_v42 = vld [vmem:[%s2817_s16 + $0x8d0] sm:$0xff]  ;;  %v750_v44 = vld [vmem:[%s2817_s16 + $0x258] sm:$0xff] }
 0x1d5   : > { %1595 = vmatpush.msra.mxu0 %v732_v46  ;;  %1618 = vmatpush.msra.mxu1 %v940_v47  ;;  %v958_v45 = vld [vmem:[%s2817_s16 + $0x8d8] sm:$0xff]  ;;  %v733_v47 = vld [vmem:[%s2817_s16 + $0x1d0] sm:$0xff] }
 0x1d6   : > { %1579 = vmatmul.f32.vlgmr.msrb.gmra.mxu3 %v2953_v43  ;;  %1619 = vmatmul.f32.vlgmr.msra.gmra.mxu1 %v2953_v43 }
 0x1d7   : > { %1643 = vmatpush.msra.mxu3 %v1181_v48  ;;  %1683 = vmatpush.msrb.mxu1 %v1182_v49  ;;  %v941_v48 = vld [vmem:[%s2817_s16 + $0x850] sm:$0xff]  ;;  %v734_v49 = vld [vmem:[%s2817_s16 + $0x1d8] sm:$0xff] }
 0x1d8   : > { %1556 = vmatpush.msrb.mxu2 %v715_v50  ;;  %1596 = vmatpush.msra.mxu0 %v716_v51  ;;  %v942_v50 = vld [vmem:[%s2817_s16 + $0x858] sm:$0xff]  ;;  %v1183_v51 = vld [vmem:[%s2817_s16 + $0xfe0] sm:$0xff] }
 0x1d9   : > { %1644 = vmatpush.msra.mxu3 %v1165_v52  ;;  %1684 = vmatpush.msrb.mxu1 %v1166_v53  ;;  %v1184_v52 = vld [vmem:[%s2817_s16 + $0xfe8] sm:$0xff]  ;;  %v717_v53 = vld [vmem:[%s2817_s16 + $0x150] sm:$0xff] }
 0x1da   : > { %1557 = vmatpush.msrb.mxu2 %v699_v55  ;;  %1597 = vmatpush.msra.mxu0 %v700_v56  ;;  %v718_v55 = vld [vmem:[%s2817_s16 + $0x158] sm:$0xff] }
 0x1db   : > { %1645 = vmatpush.msra.mxu3 %v1149_v57  ;;  %1685 = vmatpush.msrb.mxu1 %v1150_v58  ;;  %v1167_v57 = vld [vmem:[%s2817_s16 + $0xf60] sm:$0xff]  ;;  %v1168_v58 = vld [vmem:[%s2817_s16 + $0xf68] sm:$0xff] }
 0x1dc   : > { %1558 = vmatpush.msrb.mxu2 %v683_v59  ;;  %1598 = vmatpush.msra.mxu0 %v684_v60  ;;  %v3239_v59 = vld [vmem:[%s3236_s11] sm:$0xff] }
 0x1dd   : > { %1559 = vmatmul.f32.vlgmr.msrb.gmra.mxu2 %v2963_v54  ;;  %1599 = vmatmul.f32.vlgmr.msra.gmra.mxu0 %v2963_v54 }
 0x1de   : > { %1623 = vmatpush.msra.mxu2 %v925_v61  ;;  %1646 = vmatpush.msra.mxu3 %v1133_v62  ;;  %v701_v61 = vld [vmem:[%s2817_s16 + $0xd0] sm:$0xff]  ;;  %v702_v62 = vld [vmem:[%s2817_s16 + $0xd8] sm:$0xff] }
 0x1df   : > { %1663 = vmatpush.msrb.mxu0 %v926_v63  ;;  %1686 = vmatpush.msrb.mxu1 %v1134_v0  ;;  %v1151_v63 = vld [vmem:[%s2817_s16 + $0xee0] sm:$0xff]  ;;  %v1152_v0 = vld [vmem:[%s2817_s16 + $0xee8] sm:$0xff] }
 0x1e0   : > { %1624 = vmatpush.msra.mxu2 %v909_v1  ;;  %1647 = vmatpush.msra.mxu3 %v1117_v2  ;;  %v685_v2 = vld [vmem:[%s2817_s16 + $0x50] sm:$0xff] }
 0x1e1   : > { %1664 = vmatpush.msrb.mxu0 %v910_v3  ;;  %1687 = vmatpush.msrb.mxu1 %v1118_v4  ;;  %v686_v3 = vld [vmem:[%s2817_s16 + $0x58] sm:$0xff]  ;;  %v1192_v4 = vperm.slane %v3239_v59, 1 }
 0x1e2   : > { %1625 = vmatpush.msra.mxu2 %v893_v5  ;;  %1648 = vmatpush.msra.mxu3 %v1101_v6  ;;  %v1194_v5 = vperm.slane %v3239_v59, 3 }
 0x1e3   : > { %1665 = vmatpush.msrb.mxu0 %v894_v7  ;;  %1688 = vmatpush.msrb.mxu1 %v1102_v8  ;;  %v927_v7 = vld [vmem:[%s2817_s16 + $0x7e0] sm:$0xff] }
 0x1e4   : > { %1626 = vmatpush.msra.mxu2 %v877_v9  ;;  %1649 = vmatpush.msra.mxu3 %v1085_v10  ;;  %v1135_v8 = vld [vmem:[%s2817_s16 + $0xe60] sm:$0xff]  ;;  %v1191_v9 = vperm.slane %v3239_v59, 0  ;;  %v928_v10 = vld [vmem:[%s2817_s16 + $0x7e8] sm:$0xff] }
 0x1e5   : > { %1666 = vmatpush.msrb.mxu0 %v878_v11  ;;  %1689 = vmatpush.msrb.mxu1 %v1086_v12  ;;  %v1136_v11 = vld [vmem:[%s2817_s16 + $0xe68] sm:$0xff] }
 0x1e6   : > { %1627 = vmatpush.msra.mxu2 %v861_v13  ;;  %1650 = vmatpush.msra.mxu3 %v1069_v14  ;;  %v911_v13 = vld [vmem:[%s2817_s16 + $0x760] sm:$0xff] }
 0x1e7   : > { %1667 = vmatpush.msrb.mxu0 %v862_v15  ;;  %1690 = vmatpush.msrb.mxu1 %v1070_v16  ;;  %v1119_v14 = vld [vmem:[%s2817_s16 + $0xde0] sm:$0xff]  ;;  %v1193_v16 = vperm.slane %v3239_v59, 2 }
 0x1e8   : > { %1628 = vmatpush.msra.mxu2 %v845_v17  ;;  %1651 = vmatpush.msra.mxu3 %v1053_v18  ;;  %v912_v17 = vld [vmem:[%s2817_s16 + $0x768] sm:$0xff] }
 0x1e9   : > { %1668 = vmatpush.msrb.mxu0 %v846_v19  ;;  %1691 = vmatpush.msrb.mxu1 %v1054_v20  ;;  %v1120_v18 = vld [vmem:[%s2817_s16 + $0xde8] sm:$0xff]  ;;  %v895_v19 = vld [vmem:[%s2817_s16 + $0x6e0] sm:$0xff] }
 0x1ea   : > { %1629 = vmatpush.msra.mxu2 %v829_v21  ;;  %1652 = vmatpush.msra.mxu3 %v1037_v22  ;;  %v1103_v20 = vld [vmem:[%s2817_s16 + $0xd60] sm:$0xff] }
 0x1eb   : > { %1669 = vmatpush.msrb.mxu0 %v830_v23  ;;  %1692 = vmatpush.msrb.mxu1 %v1038_v24  ;;  %v896_v23 = vld [vmem:[%s2817_s16 + $0x6e8] sm:$0xff] }
 0x1ec   : > { %1630 = vmatpush.msra.mxu2 %v813_v25  ;;  %1653 = vmatpush.msra.mxu3 %v1021_v26  ;;  %v1300_v56 = vpop.f32.mrf.mxu1  ;;  %v1104_v24 = vld [vmem:[%s2817_s16 + $0xd68] sm:$0xff] }
 0x1ed   : > { %1670 = vmatpush.msrb.mxu0 %v814_v27  ;;  %1693 = vmatpush.msrb.mxu1 %v1022_v28  ;;  %v879_v27 = vld [vmem:[%s2817_s16 + $0x660] sm:$0xff] }
 0x1ee   : > { %1631 = vmatpush.msra.mxu2 %v797_v29  ;;  %1654 = vmatpush.msra.mxu3 %v1005_v30  ;;  %v1087_v28 = vld [vmem:[%s2817_s16 + $0xce0] sm:$0xff] }
 0x1ef   : > { %1671 = vmatpush.msrb.mxu0 %v798_v31  ;;  %1694 = vmatpush.msrb.mxu1 %v1006_v32  ;;  %v880_v31 = vld [vmem:[%s2817_s16 + $0x668] sm:$0xff] }
 0x1f0   : > { %1632 = vmatpush.msra.mxu2 %v781_v33  ;;  %1655 = vmatpush.msra.mxu3 %v989_v34  ;;  %v1088_v32 = vld [vmem:[%s2817_s16 + $0xce8] sm:$0xff] }
 0x1f1   : > { %1672 = vmatpush.msrb.mxu0 %v782_v35  ;;  %1695 = vmatpush.msrb.mxu1 %v990_v36  ;;  %v863_v35 = vld [vmem:[%s2817_s16 + $0x5e0] sm:$0xff] }
 0x1f2   : > { %1633 = vmatpush.msra.mxu2 %v765_v37  ;;  %1656 = vmatpush.msra.mxu3 %v973_v38  ;;  %v1280_v46 = vpop.f32.mrf.mxu0  ;;  %v1260_v1 = vpop.f32.mrf.mxu3  ;;  %v1071_v36 = vld [vmem:[%s2817_s16 + $0xc60] sm:$0xff]  ;;  %v864_v38 = vld [vmem:[%s2817_s16 + $0x5e8] sm:$0xff] }
 0x1f3   : > { %1673 = vmatpush.msrb.mxu0 %v766_v39  ;;  %1696 = vmatpush.msrb.mxu1 %v974_v40  ;;  %v1281_v12 = vadd.f32 %v1280_v46, %v1192_v4  ;;  %v1072_v39 = vld [vmem:[%s2817_s16 + $0xc68] sm:$0xff] }
 0x1f4   : > { %1634 = vmatpush.msra.mxu2 %v749_v41  ;;  %1657 = vmatpush.msra.mxu3 %v957_v42  ;;  %v847_v42 = vld [vmem:[%s2817_s16 + $0x560] sm:$0xff]  ;;  %v848_v46 = vld [vmem:[%s2817_s16 + $0x568] sm:$0xff] }
 0x1f5   : > { %1674 = vmatpush.msrb.mxu0 %v750_v44  ;;  %1697 = vmatpush.msrb.mxu1 %v958_v45  ;;  %v1380_v22 = vpop.f32.mrf.mxu1  ;;  %v1301_v26 = vadd.f32 %v1300_v56, %v1281_v12  ;;  %v1055_v44 = vld [vmem:[%s2817_s16 + $0xbe0] sm:$0xff]  ;;  %v992_v4 = vld [vmem:[%s2817_s16 + $0x9e8] sm:$0xff] }
 0x1f6   : > { %1635 = vmatpush.msra.mxu2 %v733_v47  ;;  %1658 = vmatpush.msra.mxu3 %v941_v48  ;;  %v1056_v47 = vld [vmem:[%s2817_s16 + $0xbe8] sm:$0xff]  ;;  %v815_v56 = vld [vmem:[%s2817_s16 + $0x460] sm:$0xff] }
 0x1f7   : > { %1675 = vmatpush.msrb.mxu0 %v734_v49  ;;  %1698 = vmatpush.msrb.mxu1 %v942_v50  ;;  %v1879_v40 = vrot.slane %v1301_v26, 6  ;;  %v831_v49 = vld [vmem:[%s2817_s16 + $0x4e0] sm:$0xff]  ;;  %v960_v12 = vld [vmem:[%s2817_s16 + $0x8e8] sm:$0xff]  ;;  %v1154_v26 = vld [vmem:[%s2817_s16 + $0xef8] sm:$0xff] }
 0x1f8   : > { %1659 = vmatmul.f32.vlgmr.msra.gmra.mxu3 %v2953_v43  ;;  %1699 = vmatmul.f32.vlgmr.msrb.gmra.mxu1 %v2953_v43  ;;  %v1240_v60 = vpop.f32.mrf.mxu2  ;;  %v1039_v50 = vld [vmem:[%s2817_s16 + $0xb60] sm:$0xff] }
 0x1f9   : > { %1723 = vmatpush.msrb.mxu3 %v1183_v51  ;;  %1763 = vmatpush.msra.mxu1 %v1184_v52  ;;  %v1241_v21 = vadd.f32 %v1240_v60, %v1191_v9  ;;  %v832_v52 = vld [vmem:[%s2817_s16 + $0x4e8] sm:$0xff]  ;;  %v751_v9 = vld [vmem:[%s2817_s16 + $0x260] sm:$0xff] }
 0x1fa   : > { %1636 = vmatpush.msra.mxu2 %v717_v53  ;;  %1676 = vmatpush.msrb.mxu0 %v718_v55  ;;  %v1040_v53 = vld [vmem:[%s2817_s16 + $0xb68] sm:$0xff] }
 0x1fb   : > { %1724 = vmatpush.msrb.mxu3 %v1167_v57  ;;  %1764 = vmatpush.msra.mxu1 %v1168_v58  ;;  %v1340_v33 = vpop.f32.mrf.mxu3  ;;  %v1261_v34 = vadd.f32 %v1260_v1, %v1241_v21  ;;  %v1023_v57 = vld [vmem:[%s2817_s16 + $0xae0] sm:$0xff]  ;;  %v816_v58 = vld [vmem:[%s2817_s16 + $0x468] sm:$0xff]  ;;  %v1169_v21 = vld [vmem:[%s2817_s16 + $0xf70] sm:$0xff] }
 0x1fc   : > { %1637 = vmatpush.msra.mxu2 %v701_v61  ;;  %1677 = vmatpush.msrb.mxu0 %v702_v62  ;;  %v1360_v6 = vpop.f32.mrf.mxu0  ;;  %v1024_v60 = vld [vmem:[%s2817_s16 + $0xae8] sm:$0xff]  ;;  %v799_v61 = vld [vmem:[%s2817_s16 + $0x3e0] sm:$0xff] }
 0x1fd   : > { %1725 = vmatpush.msrb.mxu3 %v1151_v63  ;;  %1765 = vmatpush.msra.mxu1 %v1152_v0  ;;  %v1361_v15 = vadd.f32 %v1360_v6, %v1194_v5  ;;  %v1892_v48 = vsel %vm1891_vm2, %v1261_v34, %v1879_v40  ;;  %v1007_v62 = vld [vmem:[%s2817_s16 + $0xa60] sm:$0xff]  ;;  %v800_v63 = vld [vmem:[%s2817_s16 + $0x3e8] sm:$0xff]  ;;  %v1121_v34 = vld [vmem:[%s2817_s16 + $0xdf0] sm:$0xff] }
 0x1fe   : > { %1638 = vmatpush.msra.mxu2 %v685_v2  ;;  %1678 = vmatpush.msrb.mxu0 %v686_v3  ;;  %v1008_v0 = vld [vmem:[%s2817_s16 + $0xa68] sm:$0xff]  ;;  %v783_v1 = vld [vmem:[%s2817_s16 + $0x360] sm:$0xff]  ;;  %v1106_v40 = vld [vmem:[%s2817_s16 + $0xd78] sm:$0xff] }
 0x1ff   : > { %1639 = vmatmul.f32.vlgmr.msra.gmra.mxu2 %v2963_v54  ;;  %1679 = vmatmul.f32.vlgmr.msrb.gmra.mxu0 %v2963_v54  ;;  %v1381_v29 = vadd.f32 %v1380_v22, %v1361_v15  ;;  %v991_v2 = vld [vmem:[%s2817_s16 + $0x9e0] sm:$0xff]  ;;  %v784_v3 = vld [vmem:[%s2817_s16 + $0x368] sm:$0xff]  ;;  %v1170_v22 = vld [vmem:[%s2817_s16 + $0xf78] sm:$0xff] }
 0x200   : > { %1703 = vmatpush.msrb.mxu2 %v927_v7  ;;  %1726 = vmatpush.msrb.mxu3 %v1135_v8  ;;  %v767_v5 = vld [vmem:[%s2817_s16 + $0x2e0] sm:$0xff]  ;;  %v768_v7 = vld [vmem:[%s2817_s16 + $0x2e8] sm:$0xff] }
 0x201   : > { %1743 = vmatpush.msra.mxu0 %v928_v10  ;;  %1766 = vmatpush.msra.mxu1 %v1136_v11  ;;  %v1881_v41 = vrot.slane %v1381_v29, 2  ;;  %v975_v6 = vld [vmem:[%s2817_s16 + $0x960] sm:$0xff]  ;;  %v976_v8 = vld [vmem:[%s2817_s16 + $0x968] sm:$0xff]  ;;  %v929_v29 = vld [vmem:[%s2817_s16 + $0x7f0] sm:$0xff] }
 0x202   : > { %1704 = vmatpush.msrb.mxu2 %v911_v13  ;;  %1727 = vmatpush.msrb.mxu3 %v1119_v14  ;;  %v1320_v25 = vpop.f32.mrf.mxu2  ;;  %v959_v10 = vld [vmem:[%s2817_s16 + $0x8e0] sm:$0xff]  ;;  %v752_v11 = vld [vmem:[%s2817_s16 + $0x268] sm:$0xff] }
 0x203   : > { %1744 = vmatpush.msra.mxu0 %v912_v17  ;;  %1767 = vmatpush.msra.mxu1 %v1120_v18  ;;  %v1321_v30 = vadd.f32 %v1320_v25, %v1193_v16  ;;  %v735_v13 = vld [vmem:[%s2817_s16 + $0x1e0] sm:$0xff]  ;;  %v736_v15 = vld [vmem:[%s2817_s16 + $0x1e8] sm:$0xff]  ;;  %v1185_v17 = vld [vmem:[%s2817_s16 + $0xff0] sm:$0xff] }
 0x204   : > { %1705 = vmatpush.msrb.mxu2 %v895_v19  ;;  %1728 = vmatpush.msrb.mxu3 %v1103_v20  ;;  %v943_v14 = vld [vmem:[%s2817_s16 + $0x860] sm:$0xff]  ;;  %v944_v16 = vld [vmem:[%s2817_s16 + $0x868] sm:$0xff]  ;;  %v1186_v18 = vld [vmem:[%s2817_s16 + $0xff8] sm:$0xff] }
 0x205   : > { %1745 = vmatpush.msra.mxu0 %v896_v23  ;;  %1768 = vmatpush.msra.mxu1 %v1104_v24  ;;  %v1341_v37 = vadd.f32 %v1340_v33, %v1321_v30  ;;  %v719_v19 = vld [vmem:[%s2817_s16 + $0x160] sm:$0xff]  ;;  %v720_v20 = vld [vmem:[%s2817_s16 + $0x168] sm:$0xff]  ;;  %v1153_v25 = vld [vmem:[%s2817_s16 + $0xef0] sm:$0xff] }
 0x206   : > { %1706 = vmatpush.msrb.mxu2 %v879_v27  ;;  %1729 = vmatpush.msrb.mxu3 %v1087_v28  ;;  %v703_v23 = vld [vmem:[%s2817_s16 + $0xe0] sm:$0xff]  ;;  %v704_v24 = vld [vmem:[%s2817_s16 + $0xe8] sm:$0xff]  ;;  %v1137_v30 = vld [vmem:[%s2817_s16 + $0xe70] sm:$0xff] }
 0x207   : > { %1746 = vmatpush.msra.mxu0 %v880_v31  ;;  %1769 = vmatpush.msra.mxu1 %v1088_v32  ;;  %v1880_v45 = vrot.slane %v1341_v37, 4  ;;  %v687_v27 = vld [vmem:[%s2817_s16 + $0x60] sm:$0xff]  ;;  %v688_v28 = vld [vmem:[%s2817_s16 + $0x68] sm:$0xff]  ;;  %v930_v31 = vld [vmem:[%s2817_s16 + $0x7f8] sm:$0xff] }
 0x208   : > { %1707 = vmatpush.msrb.mxu2 %v863_v35  ;;  %1730 = vmatpush.msrb.mxu3 %v1071_v36  ;;  %v1138_v32 = vld [vmem:[%s2817_s16 + $0xe78] sm:$0xff]  ;;  %v913_v33 = vld [vmem:[%s2817_s16 + $0x770] sm:$0xff] }
 0x209   : > { %1747 = vmatpush.msra.mxu0 %v864_v38  ;;  %1770 = vmatpush.msra.mxu1 %v1072_v39  ;;  %v1894_v51 = vsel %vm1893_vm3, %v1880_v45, %v1881_v41  ;;  %v914_v35 = vld [vmem:[%s2817_s16 + $0x778] sm:$0xff]  ;;  %v897_v37 = vld [vmem:[%s2817_s16 + $0x6f0] sm:$0xff] }
 0x20a   : > { %1708 = vmatpush.msrb.mxu2 %v847_v42  ;;  %1731 = vmatpush.msrb.mxu3 %v1055_v44  ;;  %v1895_v55 = vsel %vm474_vm0, %v1892_v48, %v1894_v51  ;;  %v1122_v36 = vld [vmem:[%s2817_s16 + $0xdf8] sm:$0xff]  ;;  %v1105_v38 = vld [vmem:[%s2817_s16 + $0xd70] sm:$0xff] }
 0x20b   : > { %1748 = vmatpush.msra.mxu0 %v848_v46  ;;  %1771 = vmatpush.msra.mxu1 %v1056_v47  ;;  %1909 = vst [vmem:[%s3289_s12] sm:$0xff] %v1895_v55  ;;  %v898_v39 = vld [vmem:[%s2817_s16 + $0x6f8] sm:$0xff]  ;;  %v881_v41 = vld [vmem:[%s2817_s16 + $0x670] sm:$0xff] }
 0x20c   : > { %1709 = vmatpush.msrb.mxu2 %v831_v49  ;;  %1732 = vmatpush.msrb.mxu3 %v1039_v50  ;;  %v1089_v42 = vld [vmem:[%s2817_s16 + $0xcf0] sm:$0xff]  ;;  %v882_v44 = vld [vmem:[%s2817_s16 + $0x678] sm:$0xff] }
 0x20d   : > { %1749 = vmatpush.msra.mxu0 %v832_v52  ;;  %1772 = vmatpush.msra.mxu1 %v1040_v53  ;;  %v1090_v45 = vld [vmem:[%s2817_s16 + $0xcf8] sm:$0xff]  ;;  %v865_v46 = vld [vmem:[%s2817_s16 + $0x5f0] sm:$0xff] }
 0x20e   : > { %1710 = vmatpush.msrb.mxu2 %v815_v56  ;;  %1733 = vmatpush.msrb.mxu3 %v1023_v57  ;;  %v1073_v47 = vld [vmem:[%s2817_s16 + $0xc70] sm:$0xff]  ;;  %v866_v48 = vld [vmem:[%s2817_s16 + $0x5f8] sm:$0xff] }
 0x20f   : > { %1750 = vmatpush.msra.mxu0 %v816_v58  ;;  %1773 = vmatpush.msra.mxu1 %v1024_v60  ;;  %v1074_v49 = vld [vmem:[%s2817_s16 + $0xc78] sm:$0xff]  ;;  %v849_v50 = vld [vmem:[%s2817_s16 + $0x570] sm:$0xff] }
 0x210   : > { %1711 = vmatpush.msrb.mxu2 %v799_v61  ;;  %1734 = vmatpush.msrb.mxu3 %v1007_v62  ;;  %v1057_v51 = vld [vmem:[%s2817_s16 + $0xbf0] sm:$0xff]  ;;  %v850_v52 = vld [vmem:[%s2817_s16 + $0x578] sm:$0xff] }
 0x211   : > { %1751 = vmatpush.msra.mxu0 %v800_v63  ;;  %1774 = vmatpush.msra.mxu1 %v1008_v0  ;;  %v1058_v53 = vld [vmem:[%s2817_s16 + $0xbf8] sm:$0xff]  ;;  %v833_v55 = vld [vmem:[%s2817_s16 + $0x4f0] sm:$0xff] }
 0x212   : > { %1712 = vmatpush.msrb.mxu2 %v783_v1  ;;  %1735 = vmatpush.msrb.mxu3 %v991_v2  ;;  %v1041_v56 = vld [vmem:[%s2817_s16 + $0xb70] sm:$0xff]  ;;  %v834_v57 = vld [vmem:[%s2817_s16 + $0x4f8] sm:$0xff] }
 0x213   : > { %1752 = vmatpush.msra.mxu0 %v784_v3  ;;  %1775 = vmatpush.msra.mxu1 %v992_v4  ;;  %v1042_v58 = vld [vmem:[%s2817_s16 + $0xb78] sm:$0xff]  ;;  %v817_v60 = vld [vmem:[%s2817_s16 + $0x470] sm:$0xff] }
 0x214   : > { %1713 = vmatpush.msrb.mxu2 %v767_v5  ;;  %1736 = vmatpush.msrb.mxu3 %v975_v6  ;;  %v1025_v61 = vld [vmem:[%s2817_s16 + $0xaf0] sm:$0xff]  ;;  %v818_v62 = vld [vmem:[%s2817_s16 + $0x478] sm:$0xff] }
 0x215   : > { %1753 = vmatpush.msra.mxu0 %v768_v7  ;;  %1776 = vmatpush.msra.mxu1 %v976_v8  ;;  %v1026_v63 = vld [vmem:[%s2817_s16 + $0xaf8] sm:$0xff]  ;;  %v801_v0 = vld [vmem:[%s2817_s16 + $0x3f0] sm:$0xff] }
 0x216   : > { %1714 = vmatpush.msrb.mxu2 %v751_v9  ;;  %1737 = vmatpush.msrb.mxu3 %v959_v10  ;;  %v1009_v1 = vld [vmem:[%s2817_s16 + $0xa70] sm:$0xff]  ;;  %v1440_v2 = vpop.f32.mrf.mxu0  ;;  %v802_v3 = vld [vmem:[%s2817_s16 + $0x3f8] sm:$0xff] }
 0x217   : > { %1754 = vmatpush.msra.mxu0 %v752_v11  ;;  %1777 = vmatpush.msra.mxu1 %v960_v12  ;;  %v1010_v4 = vld [vmem:[%s2817_s16 + $0xa78] sm:$0xff]  ;;  %v785_v5 = vld [vmem:[%s2817_s16 + $0x370] sm:$0xff] }
 0x218   : > { %1715 = vmatpush.msrb.mxu2 %v735_v13  ;;  %1738 = vmatpush.msrb.mxu3 %v943_v14  ;;  %v993_v6 = vld [vmem:[%s2817_s16 + $0x9f0] sm:$0xff]  ;;  %v786_v7 = vld [vmem:[%s2817_s16 + $0x378] sm:$0xff] }
 0x219   : > { %1755 = vmatpush.msra.mxu0 %v736_v15  ;;  %1778 = vmatpush.msra.mxu1 %v944_v16  ;;  %v994_v8 = vld [vmem:[%s2817_s16 + $0x9f8] sm:$0xff]  ;;  %v769_v9 = vld [vmem:[%s2817_s16 + $0x2f0] sm:$0xff]  ;;  %v1460_v15 = vpop.f32.mrf.mxu1 }
 0x21a   : > { %1739 = vmatmul.f32.vlgmr.msrb.gmra.mxu3 %v2953_v43  ;;  %1779 = vmatmul.f32.vlgmr.msra.gmra.mxu1 %v2953_v43  ;;  %v977_v10 = vld [vmem:[%s2817_s16 + $0x970] sm:$0xff]  ;;  %v770_v11 = vld [vmem:[%s2817_s16 + $0x2f8] sm:$0xff] }
 0x21b   : > { %1803 = vmatpush.msra.mxu3 %v1185_v17  ;;  %1843 = vmatpush.msrb.mxu1 %v1186_v18  ;;  %v978_v12 = vld [vmem:[%s2817_s16 + $0x978] sm:$0xff]  ;;  %v753_v13 = vld [vmem:[%s2817_s16 + $0x270] sm:$0xff] }
 0x21c   : > { %1716 = vmatpush.msrb.mxu2 %v719_v19  ;;  %1756 = vmatpush.msra.mxu0 %v720_v20  ;;  %v961_v14 = vld [vmem:[%s2817_s16 + $0x8f0] sm:$0xff]  ;;  %v1400_v16 = vpop.f32.mrf.mxu2  ;;  %v754_v17 = vld [vmem:[%s2817_s16 + $0x278] sm:$0xff]  ;;  %v1196_v19 = vperm.slane %v3239_v59, 5 }
 0x21d   : > { %1804 = vmatpush.msra.mxu3 %v1169_v21  ;;  %1844 = vmatpush.msrb.mxu1 %v1170_v22  ;;  %v962_v18 = vld [vmem:[%s2817_s16 + $0x8f8] sm:$0xff]  ;;  %v737_v20 = vld [vmem:[%s2817_s16 + $0x1f0] sm:$0xff]  ;;  %v1198_v22 = vperm.slane %v3239_v59, 7 }
 0x21e   : > { %1717 = vmatpush.msrb.mxu2 %v703_v23  ;;  %1757 = vmatpush.msra.mxu0 %v704_v24  ;;  %v945_v21 = vld [vmem:[%s2817_s16 + $0x870] sm:$0xff]  ;;  %v1420_v23 = vpop.f32.mrf.mxu3  ;;  %v738_v24 = vld [vmem:[%s2817_s16 + $0x1f8] sm:$0xff] }
 0x21f   : > { %1805 = vmatpush.msra.mxu3 %v1153_v25  ;;  %1845 = vmatpush.msrb.mxu1 %v1154_v26  ;;  %v946_v25 = vld [vmem:[%s2817_s16 + $0x878] sm:$0xff] }
 0x220   : > { %1718 = vmatpush.msrb.mxu2 %v687_v27  ;;  %1758 = vmatpush.msra.mxu0 %v688_v28  ;;  %v1195_v27 = vperm.slane %v3239_v59, 4  ;;  %v721_v28 = vld [vmem:[%s2817_s16 + $0x170] sm:$0xff] }
 0x221   : > { %1719 = vmatmul.f32.vlgmr.msrb.gmra.mxu2 %v2963_v54  ;;  %1759 = vmatmul.f32.vlgmr.msra.gmra.mxu0 %v2963_v54 }
 0x222   : > { %1783 = vmatpush.msra.mxu2 %v929_v29  ;;  %1806 = vmatpush.msra.mxu3 %v1137_v30  ;;  %v722_v29 = vld [vmem:[%s2817_s16 + $0x178] sm:$0xff]  ;;  %v1441_v30 = vadd.f32 %v1440_v2, %v1196_v19 }
 0x223   : > { %1823 = vmatpush.msrb.mxu0 %v930_v31  ;;  %1846 = vmatpush.msrb.mxu1 %v1138_v32  ;;  %v1197_v32 = vperm.slane %v3239_v59, 6 }
 0x224   : > { %1784 = vmatpush.msra.mxu2 %v913_v33  ;;  %1807 = vmatpush.msra.mxu3 %v1121_v34  ;;  %v705_v33 = vld [vmem:[%s2817_s16 + $0xf0] sm:$0xff]  ;;  %v706_v34 = vld [vmem:[%s2817_s16 + $0xf8] sm:$0xff] }
 0x225   : > { %1824 = vmatpush.msrb.mxu0 %v914_v35  ;;  %1847 = vmatpush.msrb.mxu1 %v1122_v36  ;;  %v1401_v35 = vadd.f32 %v1400_v16, %v1195_v27 }
 0x226   : > { %1785 = vmatpush.msra.mxu2 %v897_v37  ;;  %1808 = vmatpush.msra.mxu3 %v1105_v38  ;;  %v689_v37 = vld [vmem:[%s2817_s16 + $0x70] sm:$0xff]  ;;  %v690_v38 = vld [vmem:[%s2817_s16 + $0x78] sm:$0xff]  ;;  %s2491_s16 = scalar_lea.hbm %s2490_s27, 32 }
 0x227   : > { %1825 = vmatpush.msrb.mxu0 %v898_v39  ;;  %1848 = vmatpush.msrb.mxu1 %v1106_v40  ;;  %v1461_v40 = vadd.f32 %v1460_v15, %v1441_v30  ;;  %p2492_p1 = scmp.ne.s32.totalorder %s2490_s27, %s2491_s16  ;;  %p2497_p11 = scmp.lt.s32.totalorder %s2495_s19, %s2491_s16 }
 0x228   : > { %1786 = vmatpush.msra.mxu2 %v881_v41  ;;  %1809 = vmatpush.msra.mxu3 %v1089_v42 }
 0x229   : > { %1826 = vmatpush.msrb.mxu0 %v882_v44  ;;  %1849 = vmatpush.msrb.mxu1 %v1090_v45  ;;  %v1421_v44 = vadd.f32 %v1420_v23, %v1401_v35  ;;  %v1882_v45 = vrot.slane %v1461_v40, 6  ;;  %p2493_p4 = pnand %p2492_p1, %p2736_p5  ;;  %p2498_p12 = por %p2497_p11, %p2496_p10 }
 0x22a   : > { %1787 = vmatpush.msra.mxu2 %v865_v46  ;;  %1810 = vmatpush.msra.mxu3 %v1073_v47 }
 0x22b   : > { %1827 = vmatpush.msrb.mxu0 %v866_v48  ;;  %1850 = vmatpush.msrb.mxu1 %v1074_v49  ;;  %v1896_v48 = vsel %vm1891_vm2, %v1421_v44, %v1882_v45  ;;  %p2494_p8 = pneg %p2493_p4 }
 0x22c   : > { %1788 = vmatpush.msra.mxu2 %v849_v50  ;;  %1811 = vmatpush.msra.mxu3 %v1057_v51 }
 0x22d   : > { %1828 = vmatpush.msrb.mxu0 %v850_v52  ;;  %1851 = vmatpush.msrb.mxu1 %v1058_v53  ;;  %v1188_v52 = vld [vmem:[%s3236_s11 + $0x8] sm:$0xff]  ;;  %p2499_p13 = pnand %p2498_p12, %p2494_p8 }
 0x22e   : > { %1789 = vmatpush.msra.mxu2 %v833_v55  ;;  %1812 = vmatpush.msra.mxu3 %v1041_v56  ;;  %v1200_v56 = vperm.slane %v1188_v52, 1  ;;  %v1206_v19 = vperm.slane %v1188_v52, 7 }
 0x22f   : > { %1829 = vmatpush.msrb.mxu0 %v834_v57  ;;  %1852 = vmatpush.msrb.mxu1 %v1042_v58  ;;  %v1202_v57 = vperm.slane %v1188_v52, 3 }
 0x230   : > { %1790 = vmatpush.msra.mxu2 %v817_v60  ;;  %1813 = vmatpush.msra.mxu3 %v1025_v61  ;;  %v1199_v61 = vperm.slane %v1188_v52, 0 }
 0x231   : > { %1830 = vmatpush.msrb.mxu0 %v818_v62  ;;  %1853 = vmatpush.msrb.mxu1 %v1026_v63  ;;  %v1540_v36 = vpop.f32.mrf.mxu1  ;;  %v1201_v63 = vperm.slane %v1188_v52, 2 }
 0x232   : > { %1791 = vmatpush.msra.mxu2 %v801_v0  ;;  %1814 = vmatpush.msra.mxu3 %v1009_v1 }
 0x233   : > { %1831 = vmatpush.msrb.mxu0 %v802_v3  ;;  %1854 = vmatpush.msrb.mxu1 %v1010_v4 }
 0x234   : > { %1792 = vmatpush.msra.mxu2 %v785_v5  ;;  %1815 = vmatpush.msra.mxu3 %v993_v6 }
 0x235   : > { %1832 = vmatpush.msrb.mxu0 %v786_v7  ;;  %1855 = vmatpush.msrb.mxu1 %v994_v8 }
 0x236   : > { %1793 = vmatpush.msra.mxu2 %v769_v9  ;;  %1816 = vmatpush.msra.mxu3 %v977_v10 }
 0x237   : > { %1833 = vmatpush.msrb.mxu0 %v770_v11  ;;  %1856 = vmatpush.msrb.mxu1 %v978_v12  ;;  %v1500_v59 = vpop.f32.mrf.mxu3 }
 0x238   : > { %1794 = vmatpush.msra.mxu2 %v753_v13  ;;  %1817 = vmatpush.msra.mxu3 %v961_v14  ;;  %v1520_v26 = vpop.f32.mrf.mxu0 }
 0x239   : > { %1834 = vmatpush.msrb.mxu0 %v754_v17  ;;  %1857 = vmatpush.msrb.mxu1 %v962_v18  ;;  %v1521_v31 = vadd.f32 %v1520_v26, %v1198_v22  ;;  %v1204_v18 = vperm.slane %v1188_v52, 5  ;;  %v1203_v22 = vperm.slane %v1188_v52, 4 }
 0x23a   : > { %1795 = vmatpush.msra.mxu2 %v737_v20  ;;  %1818 = vmatpush.msra.mxu3 %v945_v21 }
 0x23b   : > { %1835 = vmatpush.msrb.mxu0 %v738_v24  ;;  %1858 = vmatpush.msrb.mxu1 %v946_v25  ;;  %v1541_v41 = vadd.f32 %v1540_v36, %v1521_v31  ;;  %v1205_v25 = vperm.slane %v1188_v52, 6 }
 0x23c   : > { %1819 = vmatmul.f32.vlgmr.msra.gmra.mxu3 %v2953_v43  ;;  %1859 = vmatmul.f32.vlgmr.msrb.gmra.mxu1 %v2953_v43 }
 0x23d   : > { %1796 = vmatpush.msra.mxu2 %v721_v28  ;;  %1836 = vmatpush.msrb.mxu0 %v722_v29  ;;  %v1884_v46 = vrot.slane %v1541_v41, 2 }
 0x23e   : > { %v1480_v39 = vpop.f32.mrf.mxu2 }
 0x23f   : > { %1797 = vmatpush.msra.mxu2 %v705_v33  ;;  %1837 = vmatpush.msrb.mxu0 %v706_v34  ;;  %v1481_v42 = vadd.f32 %v1480_v39, %v1197_v32 }
 0x241   : > { %1798 = vmatpush.msra.mxu2 %v689_v37  ;;  %1838 = vmatpush.msrb.mxu0 %v690_v38  ;;  %v1501_v43 = vadd.f32 %v1500_v59, %v1481_v42 }
 0x242   : > { %1799 = vmatmul.f32.vlgmr.msra.gmra.mxu2 %v2963_v54  ;;  %1839 = vmatmul.f32.vlgmr.msrb.gmra.mxu0 %v2963_v54 }
 0x243   : > { %v1883_v47 = vrot.slane %v1501_v43, 4 }
 0x245   : > { %v1897_v49 = vsel %vm1893_vm3, %v1883_v47, %v1884_v46 }
 0x246   : > { %v1898_v50 = vsel %vm474_vm0, %v1896_v48, %v1897_v49 }
 0x247   : > { %1910 = vst [vmem:[%s3289_s12 + $0x8] sm:$0xff] %v1898_v50 }
 0x253   : > { %v1620_v53 = vpop.f32.mrf.mxu1 }
 0x259   : > { %v1580_v58 = vpop.f32.mrf.mxu3 }
 0x25a   : > { %v1600_v51 = vpop.f32.mrf.mxu0 }
 0x25b   : > { %v1601_v54 = vadd.f32 %v1600_v51, %v1200_v56 }
 0x25d   : > { %v1621_v3 = vadd.f32 %v1620_v53, %v1601_v54 }
 0x25f   : > { %v1885_v9 = vrot.slane %v1621_v3, 6 }
 0x260   : > { %v1560_v55 = vpop.f32.mrf.mxu2 }
 0x261   : > { %v1561_v0 = vadd.f32 %v1560_v55, %v1199_v61 }
 0x263   : > { %v1581_v7 = vadd.f32 %v1580_v58, %v1561_v0 }
 0x265   : > { %v1899_v12 = vsel %vm1891_vm2, %v1581_v7, %v1885_v9 }
 0x275   : > { %v1700_v1 = vpop.f32.mrf.mxu1 }
 0x27b   : > { %v1660_v6 = vpop.f32.mrf.mxu3 }
 0x27c   : > { %v1680_v60 = vpop.f32.mrf.mxu0 }
 0x27d   : > { %v1681_v62 = vadd.f32 %v1680_v60, %v1202_v57 }
 0x27f   : > { %v1701_v4 = vadd.f32 %v1700_v1, %v1681_v62 }
 0x281   : > { %v1887_v10 = vrot.slane %v1701_v4, 2 }
 0x282   : > { %v1640_v2 = vpop.f32.mrf.mxu2 }
 0x283   : > { %v1641_v5 = vadd.f32 %v1640_v2, %v1201_v63 }
 0x285   : > { %v1661_v8 = vadd.f32 %v1660_v6, %v1641_v5 }
 0x287   : > { %v1886_v11 = vrot.slane %v1661_v8, 4 }
 0x289   : > { %v1900_v13 = vsel %vm1893_vm3, %v1886_v11, %v1887_v10 }
 0x28a   : > { %v1901_v14 = vsel %vm474_vm0, %v1899_v12, %v1900_v13 }
 0x28b   : > { %1911 = vst [vmem:[%s3289_s12 + $0x10] sm:$0xff] %v1901_v14 }
 0x297   : > { %v1780_v16 = vpop.f32.mrf.mxu1 }
 0x29d   : > { %v1740_v20 = vpop.f32.mrf.mxu3 }
 0x29e   : > { %v1760_v15 = vpop.f32.mrf.mxu0 }
 0x29f   : > { %v1761_v23 = vadd.f32 %v1760_v15, %v1204_v18 }
 0x2a1   : > { %v1781_v29 = vadd.f32 %v1780_v16, %v1761_v23 }
 0x2a3   : > { %v1888_v35 = vrot.slane %v1781_v29, 6 }
 0x2a4   : > { %v1720_v17 = vpop.f32.mrf.mxu2 }
 0x2a5   : > { %v1721_v26 = vadd.f32 %v1720_v17, %v1203_v22 }
 0x2a7   : > { %v1741_v33 = vadd.f32 %v1740_v20, %v1721_v26 }
 0x2a9   : > { %v1902_v38 = vsel %vm1891_vm2, %v1741_v33, %v1888_v35 }
 0x2b9   : > { %v1860_v27 = vpop.f32.mrf.mxu1 }
 0x2bf   : > { %v1840_v21 = vpop.f32.mrf.mxu0  ;;  %v1820_v32 = vpop.f32.mrf.mxu3 }
 0x2c0   : > { %v1841_v24 = vadd.f32 %v1840_v21, %v1206_v19 }
 0x2c2   : > { %v1861_v30 = vadd.f32 %v1860_v27, %v1841_v24 }
 0x2c4   : > { %v1890_v36 = vrot.slane %v1861_v30, 2 }
 0x2c5   : > { %v1800_v28 = vpop.f32.mrf.mxu2 }
 0x2c6   : > { %v1801_v31 = vadd.f32 %v1800_v28, %v1205_v25 }
 0x2c8   : > { %v1821_v34 = vadd.f32 %v1820_v32, %v1801_v31 }
 0x2ca   : > { %v1889_v37 = vrot.slane %v1821_v34, 4 }
 0x2cc   : > { %v1903_v39 = vsel %vm1893_vm3, %v1889_v37, %v1890_v36 }
 0x2cd   : > { %v1904_v40 = vsel %vm474_vm0, %v1902_v38, %v1903_v39 }
 0x2ce   : > { %1912 = vst [vmem:[%s3289_s12 + $0x18] sm:$0xff] %v1904_v40 }
 0x2cf   : > { %2502 = shalt.err (!%p2499_p13)
}
 0x2d0   : > { %2150 = dma.vmem_to_hbm [thread:$0]  (%p2736_p5), %s1930_s15, 512, %s1932_s0, %s1914_s3  }
 0x2d1 PF: > { %s3499_s2 = sld [smem:[#allocation20_spill]]  ;;  %p2190_p0 = scmp.ge.s32.totalorder %s2585_s8, 2 }
 0x2d3   : > { %p2176_p3 = pnand %p2190_p0, %p2692_p6 }
 0x2d5   : > { %p2177_p7 = pneg %p2176_p3 }
 0x2d7   : > { %s1943_s18 = sand.u32 1, %s3499_s2  }
 0x2d8   : > { %s1944_s22 = scalar_lea.sflag [#allocation4], %s1943_s18 }
 0x2d9   : > { %2552 = dma.done.wait (%p2177_p7), %s1944_s22, 512  }
 0x2da   : > { %2554 = vsyncadd (%p2177_p7), %s1944_s22, 4294966784  ;;  %s26_s8 = sadd.s32 1, %s2585_s8   ;;  %s3501_s13 = sld [smem:[#allocation24_spill]] }
 0x2db   : > { %p23_p9 = scmp.ge.s32.totalorder %s26_s8, 10   ;;  %s3502_s20 = sld [smem:[#allocation26_spill]] }
 0x2dc   : > { %s3503_s24 = smov %s2561_s25  ;;  %s3504_s25 = smov %s2565_s26 }
 0x2dd   : > { %s3505_s26 = smov %s2752_s7  ;;  %s3506_s27 = smov %s2577_s29 }
 0x2de   : > { %s3507_s28 = smov %s2581_s30  ;;  %25 = sbr.rel (!%p23_p9) target bundleno = 16 (0x10), region = 125 }
 0x2e0   : > { %s3508_s29 = smov %s3501_s13 }
 0x2e1   : > { %s3509_s30 = smov %s3502_s20 }
 0x2e3   :  { %1950 = vsyncpa [#allocation3], 1 }
 0x2e4   :  { %1952 = vsyncpa [#allocation3 + $0x1], 1 }
 0x2e5   :  { %1953 = vsyncpa [#allocation6], 1 }
 0x2e6   :  { %1954 = vsyncpa [#allocation9], 1 }
 0x2e7   :  { %1955 = vsyncpa [#allocation12], 1 }
 0x2e8   :  { %1957 = vsyncpa [#allocation12 + $0x1], 1 }
 0x2e9   :  { %1958 = vsyncpa [#allocation4], 1 }
 0x2ea   :  { %1960 = vsyncpa [#allocation4 + $0x1], 1 }

</bundles_post_ra>
